<compile_context>
chip_gen: v5e
topology: v5e:2x2
jax: 0.10.0
libtpu: 0.0.40
codegen_flags: <defaults>
</compile_context>

<pallas_src>
import functools
import math

import jax
import jax.numpy as jnp
from jax import lax
from jax.experimental import pallas as pl
from jax.experimental.pallas import tpu as pltpu


# ----------------------------- fused kernel -----------------------------

def lilt_fused_kernel(hid_ref, lhid_ref, mask_ref,
                      wq_ref, bq_ref, wkv_ref, bkv_ref,
                      lwq_ref, lbq_ref, lwkv_ref, lbkv_ref,
                      wo_ref, bo_ref, go_ref, boln_ref,
                      lwo_ref, lbo_ref, lgo_ref, lboln_ref,
                      out_ref, lout_ref,
                      k_sc, v_sc, lk_sc, lv_sc,
                      q_sc, lq_sc, ctx_sc, lctx_sc,
                      *, nh, d, dl, eps):
    """One grid step == (batch b, query tile qt)."""
    qt = pl.program_id(1)
    s = k_sc.shape[0]          # full sequence length
    tq = q_sc.shape[0]         # query tile rows
    h_all = nh * d
    hl_all = nh * dl
    bf = jnp.bfloat16
    f32 = jnp.float32

    # ---- K/V projections ONCE per batch (qt axis is 'arbitrary' -> sequential per core,
    #      and the (1,S,H) input block index only changes with b, so it stays resident). ----
    @pl.when(qt == 0)
    def _():
        xb = hid_ref[0].astype(bf)                                   # (S, H) bf16
        kv = jnp.dot(xb, wkv_ref[...], preferred_element_type=f32) + bkv_ref[...]
        k_sc[...] = kv[:, :h_all].astype(bf)
        v_sc[...] = kv[:, h_all:].astype(bf)
        lxb = lhid_ref[0].astype(bf)                                 # (S, HL) bf16
        lkv = jnp.dot(lxb, lwkv_ref[...], preferred_element_type=f32) + lbkv_ref[...]
        lk_sc[...] = lkv[:, :hl_all].astype(bf)
        lv_sc[...] = lkv[:, hl_all:].astype(bf)

    # ---- Q projections for this query tile (staged to VMEM scratch) ----
    q_start = pl.multiple_of(qt * tq, tq)
    x_q = hid_ref[0, pl.ds(q_start, tq), :].astype(f32)              # (TQ, H)  residual
    lx_q = lhid_ref[0, pl.ds(q_start, tq), :].astype(f32)            # (TQ, HL) residual
    q_sc[...] = (jnp.dot(x_q.astype(bf), wq_ref[...],
                         preferred_element_type=f32) + bq_ref[...]).astype(bf)
    lq_sc[...] = (jnp.dot(lx_q.astype(bf), lwq_ref[...],
                          preferred_element_type=f32) + lbq_ref[...]).astype(bf)

    inv_sqrt_d = 1.0 / math.sqrt(d)
    inv_sqrt_dl = 1.0 / math.sqrt(dl)
    contract_last = (((1,), (1,)), ((), ()))      # contract last dims -> no K^T relayout
    # Hoist the mask broadcast out of the head loop (JAX does not CSE broadcast_in_dim).
    mask_b = jnp.broadcast_to(mask_ref[0, 0], (tq, s)).astype(f32)   # (TQ, S)

    # ---- per-head attention with a single shared softmax (.detach() is identity in the
    #      forward pass, so text/layout probabilities are bit-identical; dropout = eval). ----
    # TODO(synk): for large NH switch to a fori_loop / head-pair processing (lane-dense
    # 2*D-wide context stores) once dynamic lane-offset slices are needed.
    for h in range(nh):                           # static offsets -> lane-static slices
        c0, c1 = h * d, (h + 1) * d
        lc0, lc1 = h * dl, (h + 1) * dl
        qh = q_sc[:, c0:c1]                       # (TQ, D)  bf16
        kh = k_sc[:, c0:c1]                       # (S, D)   bf16
        lqh = lq_sc[:, lc0:lc1]                   # (TQ, DL) bf16
        lkh = lk_sc[:, lc0:lc1]                   # (S, DL)  bf16

        s_text = lax.dot_general(qh, kh, contract_last,
                                 preferred_element_type=f32) * inv_sqrt_d
        s_lay = lax.dot_general(lqh, lkh, contract_last,
                                preferred_element_type=f32) * inv_sqrt_dl
        scores = s_text + s_lay + mask_b          # (TQ, S) f32

        smax = jnp.max(scores, axis=-1, keepdims=True)
        e = jnp.exp(scores - smax)
        p = (e * pl.reciprocal(jnp.sum(e, axis=-1, keepdims=True),
                               approx=True)).astype(bf)

        ctx_sc[:, c0:c1] = jnp.dot(p, v_sc[:, c0:c1],
                                   preferred_element_type=f32).astype(bf)
        lctx_sc[:, lc0:lc1] = jnp.dot(p, lv_sc[:, lc0:lc1],
                                      preferred_element_type=f32).astype(bf)

    # ---- RobertaSelfOutput: LayerNorm(dense(ctx) + residual); dropout identity (eval). ----
    def _self_output(ctx_bf, res_f32, w_ref, b_ref, g_ref, beta_ref):
        hdn = jnp.dot(ctx_bf, w_ref[...], preferred_element_type=f32) + b_ref[...]
        hdn = hdn + res_f32
        mean = jnp.mean(hdn, axis=-1, keepdims=True)
        cen = hdn - mean
        var = jnp.mean(cen * cen, axis=-1, keepdims=True)
        return cen * lax.rsqrt(var + eps) * g_ref[...] + beta_ref[...]

    out_ref[0] = _self_output(ctx_sc[...], x_q, wo_ref, bo_ref, go_ref,
                              boln_ref).astype(out_ref.dtype)
    lout_ref[0] = _self_output(lctx_sc[...], lx_q, lwo_ref, lbo_ref, lgo_ref,
                               lboln_ref).astype(lout_ref.dtype)


# ----------------------------- wrapper -----------------------------

def lilt_attention_forward(params, hidden, layout_hidden, attention_mask):
    """Forward of LiLTAttention (eval mode, position_embedding_type='absolute')."""
    B, S, H = hidden.shape
    NH = params["num_heads"]
    csr = params["csr"]
    D = H // NH
    HL = H // csr
    DL = D // csr
    dt = hidden.dtype
    bf = jnp.bfloat16
    f32 = jnp.float32

    # Query tile: keep per-head (TQ, S) score tensors VMEM/vreg friendly.
    # TODO(synk): per-generation tile size (512 on v5e/v6e, 128-256 on v7x) via get_tpu_info.
    TQ = min(S, 256)
    if S % TQ != 0:
        TQ = S
    n_qt = S // TQ

    # bf16 weights (halve weight DMA + MXU operand footprint); biases/LN params stay f32.
    wq = params["wq"].astype(bf)
    bq = params["bq"].reshape(1, H).astype(f32)
    wkv = jnp.concatenate([params["wk"], params["wv"]], axis=1).astype(bf)     # (H, 2H)
    bkv = jnp.concatenate([params["bk"], params["bv"]]).reshape(1, 2 * H).astype(f32)
    lwq = params["lwq"].astype(bf)
    lbq = params["lbq"].reshape(1, HL).astype(f32)
    lwkv = jnp.concatenate([params["lwk"], params["lwv"]], axis=1).astype(bf)  # (HL, 2HL)
    lbkv = jnp.concatenate([params["lbk"], params["lbv"]]).reshape(1, 2 * HL).astype(f32)
    wo = params["wo"].astype(bf)
    bo = params["bo"].reshape(1, H).astype(f32)
    go = params["go"].reshape(1, H).astype(f32)
    boln = params["bo_ln"].reshape(1, H).astype(f32)
    lwo = params["lwo"].astype(bf)
    lbo = params["lbo"].reshape(1, HL).astype(f32)
    lgo = params["lgo"].reshape(1, HL).astype(f32)
    lboln = params["lbo_ln"].reshape(1, HL).astype(f32)

    kern = functools.partial(lilt_fused_kernel, nh=NH, d=D, dl=DL, eps=1e-12)

    def const2(a):  # whole-array block, same block every step (stays VMEM-resident)
        return pl.BlockSpec(a.shape, lambda b, qt: (0, 0))

    in_specs = [
        pl.BlockSpec((1, S, H), lambda b, qt: (b, 0, 0)),      # hidden (full S: K/V + Q slice)
        pl.BlockSpec((1, S, HL), lambda b, qt: (b, 0, 0)),     # layout hidden
        pl.BlockSpec((1, 1, 1, S), lambda b, qt: (b, 0, 0, 0)),  # additive mask
        const2(wq), const2(bq), const2(wkv), const2(bkv),
        const2(lwq), const2(lbq), const2(lwkv), const2(lbkv),
        const2(wo), const2(bo), const2(go), const2(boln),
        const2(lwo), const2(lbo), const2(lgo), const2(lboln),
    ]
    out_specs = [
        pl.BlockSpec((1, TQ, H), lambda b, qt: (b, qt, 0)),    # lane-dense (H-wide) writeback
        pl.BlockSpec((1, TQ, HL), lambda b, qt: (b, qt, 0)),
    ]
    scratch_shapes = [
        pltpu.VMEM((S, H), bf),    # K
        pltpu.VMEM((S, H), bf),    # V
        pltpu.VMEM((S, HL), bf),   # layout K
        pltpu.VMEM((S, HL), bf),   # layout V
        pltpu.VMEM((TQ, H), bf),   # Q tile
        pltpu.VMEM((TQ, HL), bf),  # layout Q tile
        pltpu.VMEM((TQ, H), bf),   # context
        pltpu.VMEM((TQ, HL), bf),  # layout context
    ]

    # Advisory cost estimate (helps XLA schedule the custom call).
    flops = B * (2 * S * H * (2 * H) + 2 * S * HL * (2 * HL)        # K/V projections
                 + 2 * S * H * H + 2 * S * HL * HL                  # Q projections
                 + NH * S * S * (4 * D + 4 * DL)                    # QK^T + PV (text+layout)
                 + 2 * S * H * H + 2 * S * HL * HL)                 # output projections
    bytes_accessed = (4 * (2 * hidden.size + 2 * layout_hidden.size + attention_mask.size)
                      + 2 * (wq.size + wkv.size + lwq.size + lwkv.size + wo.size + lwo.size)
                      + 4 * (bq.size + bkv.size + lbq.size + lbkv.size + bo.size + go.size
                             + boln.size + lbo.size + lgo.size + lboln.size))
    cost = pl.CostEstimate(flops=flops, transcendentals=B * NH * S * S,
                           bytes_accessed=bytes_accessed)

    # q-tile axis must stay 'arbitrary' (K/V scratch is filled at qt==0 and reused).
    # TODO(synk): for B==1 on v7x, split the q-tile range across the two TensorCores
    # explicitly (recompute K/V per core) to avoid idling one core.
    out, lout = pl.pallas_call(
        kern,
        grid=(B, n_qt),
        in_specs=in_specs,
        out_specs=out_specs,
        out_shape=(jax.ShapeDtypeStruct((B, S, H), dt),
                   jax.ShapeDtypeStruct((B, S, HL), dt)),
        scratch_shapes=scratch_shapes,
        compiler_params=pltpu.CompilerParams(
            dimension_semantics=("parallel", "arbitrary"),
            vmem_limit_bytes=32 * 1024 * 1024),
        cost_estimate=cost,
    )(hidden, layout_hidden, attention_mask,
      wq, bq, wkv, bkv, lwq, lbq, lwkv, lbkv,
      wo, bo, go, boln, lwo, lbo, lgo, lboln)
    return out, lout


# ----------------------------- pure-JAX reference (f32) -----------------------------

def lilt_attention_reference(params, hidden, layout_hidden, attention_mask):
    B, S, H = hidden.shape
    NH = params["num_heads"]
    csr = params["csr"]
    D = H // NH
    HL = H // csr
    DL = D // csr

    q = hidden @ params["wq"] + params["bq"]
    k = hidden @ params["wk"] + params["bk"]
    v = hidden @ params["wv"] + params["bv"]
    lq = layout_hidden @ params["lwq"] + params["lbq"]
    lk = layout_hidden @ params["lwk"] + params["lbk"]
    lv = layout_hidden @ params["lwv"] + params["lbv"]

    def split(x, dh):
        return x.reshape(B, S, NH, dh).transpose(0, 2, 1, 3)

    q, k, v = split(q, D), split(k, D), split(v, D)
    lq, lk, lv = split(lq, DL), split(lk, DL), split(lv, DL)

    st = jnp.einsum("bhqd,bhkd->bhqk", q, k) / math.sqrt(D)
    sl = jnp.einsum("bhqd,bhkd->bhqk", lq, lk) / math.sqrt(DL)
    scores = st + sl + attention_mask
    # .detach() is identity in forward -> layout probs identical to text probs.
    p = jax.nn.softmax(scores, axis=-1)
    ctx = jnp.einsum("bhqk,bhkd->bhqd", p, v).transpose(0, 2, 1, 3).reshape(B, S, H)
    lctx = jnp.einsum("bhqk,bhkd->bhqd", p, lv).transpose(0, 2, 1, 3).reshape(B, S, HL)

    def self_out(c, res, w, b, g, beta):
        h = c @ w + b + res
        mu = h.mean(-1, keepdims=True)
        var = ((h - mu) ** 2).mean(-1, keepdims=True)
        return (h - mu) / jnp.sqrt(var + 1e-12) * g + beta

    out = self_out(ctx, hidden, params["wo"], params["bo"], params["go"], params["bo_ln"])
    lout = self_out(lctx, layout_hidden, params["lwo"], params["lbo"],
                    params["lgo"], params["lbo_ln"])
    return out, lout


# ----------------------------- parameter init -----------------------------

def init_params(key, hidden_size, num_heads, csr, dtype=jnp.float32):
    hl = hidden_size // csr
    ks = jax.random.split(key, 8)
    s = 0.02

    def w(k, shape):
        return (s * jax.random.normal(k, shape)).astype(dtype)

    params = dict(num_heads=num_heads, csr=csr)
    # text Q/K/V (stored as (in, out) so kernel does x @ w)
    params["wq"], params["bq"] = w(ks[0], (hidden_size, hidden_size)), jnp.zeros((hidden_size,), dtype)
    params["wk"], params["bk"] = w(ks[1], (hidden_size, hidden_size)), jnp.zeros((hidden_size,), dtype)
    params["wv"], params["bv"] = w(ks[2], (hidden_size, hidden_size)), jnp.zeros((hidden_size,), dtype)
    # layout Q/K/V
    params["lwq"], params["lbq"] = w(ks[3], (hl, hl)), jnp.zeros((hl,), dtype)
    params["lwk"], params["lbk"] = w(ks[4], (hl, hl)), jnp.zeros((hl,), dtype)
    params["lwv"], params["lbv"] = w(ks[5], (hl, hl)), jnp.zeros((hl,), dtype)
    # output (RobertaSelfOutput) for text
    params["wo"], params["bo"] = w(ks[6], (hidden_size, hidden_size)), jnp.zeros((hidden_size,), dtype)
    params["go"], params["bo_ln"] = jnp.ones((hidden_size,), dtype), jnp.zeros((hidden_size,), dtype)
    # output for layout
    params["lwo"], params["lbo"] = w(ks[7], (hl, hl)), jnp.zeros((hl,), dtype)
    params["lgo"], params["lbo_ln"] = jnp.ones((hl,), dtype), jnp.zeros((hl,), dtype)
    return params


# ----------------------------- main -----------------------------

if __name__ == "__main__":
    # config: hidden_size=64, num_attention_heads=4, channel_shrink_ratio=2,
    #         position_embedding_type='absolute', dropout=0 (eval), layer_norm_eps=1e-12
    B, S, H, NH, CSR = 2, 8, 64, 4, 2
    HL = H // CSR

    key = jax.random.PRNGKey(0)
    kp, kh, kl = jax.random.split(key, 3)

    params = init_params(kp, H, NH, CSR)
    hidden = jax.random.normal(kh, (B, S, H), dtype=jnp.float32)
    layout_hidden = jax.random.normal(kl, (B, S, HL), dtype=jnp.float32)

    # HF-style additive attention mask, shape (B, 1, 1, S); mask out last 2 keys of batch 1.
    mask = jnp.zeros((B, 1, 1, S), dtype=jnp.float32)
    mask = mask.at[1, 0, 0, -2:].set(-1e9)

    # TODO(synk): relative_key / relative_key_query position embeddings not implemented
    # (default config uses 'absolute', which skips that branch).

    attn_out, attn_out_layout = lilt_attention_forward(params, hidden, layout_hidden, mask)
    jax.block_until_ready((attn_out, attn_out_layout))

    ref_out, ref_lout = lilt_attention_reference(params, hidden, layout_hidden, mask)
    assert attn_out.shape == (B, S, H)
    assert attn_out_layout.shape == (B, S, HL)
    assert bool(jnp.allclose(attn_out, ref_out, atol=5e-2, rtol=5e-2))
    assert bool(jnp.allclose(attn_out_layout, ref_lout, atol=5e-2, rtol=5e-2))
    print("KERNEL_OK")
</pallas_src>

<mosaic_0001>
module attributes {stable_mosaic.version = 11 : i64} {
  func.func @lilt_fused_kernel(%arg0: i32, %arg1: i32, %arg2: memref<1x8x64xf32, #tpu.memory_space<vmem>>, %arg3: memref<1x8x32xf32, #tpu.memory_space<vmem>>, %arg4: memref<1x1x1x8xf32, #tpu.memory_space<vmem>>, %arg5: memref<64x64xbf16, #tpu.memory_space<vmem>>, %arg6: memref<1x64xf32, #tpu.memory_space<vmem>>, %arg7: memref<64x128xbf16, #tpu.memory_space<vmem>>, %arg8: memref<1x128xf32, #tpu.memory_space<vmem>>, %arg9: memref<32x32xbf16, #tpu.memory_space<vmem>>, %arg10: memref<1x32xf32, #tpu.memory_space<vmem>>, %arg11: memref<32x64xbf16, #tpu.memory_space<vmem>>, %arg12: memref<1x64xf32, #tpu.memory_space<vmem>>, %arg13: memref<64x64xbf16, #tpu.memory_space<vmem>>, %arg14: memref<1x64xf32, #tpu.memory_space<vmem>>, %arg15: memref<1x64xf32, #tpu.memory_space<vmem>>, %arg16: memref<1x64xf32, #tpu.memory_space<vmem>>, %arg17: memref<32x32xbf16, #tpu.memory_space<vmem>>, %arg18: memref<1x32xf32, #tpu.memory_space<vmem>>, %arg19: memref<1x32xf32, #tpu.memory_space<vmem>>, %arg20: memref<1x32xf32, #tpu.memory_space<vmem>>, %arg21: memref<1x8x64xf32, #tpu.memory_space<vmem>>, %arg22: memref<1x8x32xf32, #tpu.memory_space<vmem>>, %arg23: memref<8x64xbf16, #tpu.memory_space<vmem>>, %arg24: memref<8x64xbf16, #tpu.memory_space<vmem>>, %arg25: memref<8x32xbf16, #tpu.memory_space<vmem>>, %arg26: memref<8x32xbf16, #tpu.memory_space<vmem>>, %arg27: memref<8x64xbf16, #tpu.memory_space<vmem>>, %arg28: memref<8x32xbf16, #tpu.memory_space<vmem>>, %arg29: memref<8x64xbf16, #tpu.memory_space<vmem>>, %arg30: memref<8x32xbf16, #tpu.memory_space<vmem>>) attributes {dimension_semantics = [#tpu.dimension_semantics<parallel>, #tpu.dimension_semantics<arbitrary>], iteration_bounds = array<i64: 2, 1>, scalar_prefetch = 0 : i64, scratch_operands = 8 : i64, tpu.core_type = #tpu.core_type<tc>, window_params = [{transform_indices = @transform_0, window_bounds = array<i64: 1, 8, 64>}, {transform_indices = @transform_1, window_bounds = array<i64: 1, 8, 32>}, {transform_indices = @transform_2, window_bounds = array<i64: 1, 1, 1, 8>}, {pipeline_mode = #tpu.pipeline_mode<synchronous>, transform_indices = @transform_3, window_bounds = array<i64: 64, 64>}, {pipeline_mode = #tpu.pipeline_mode<synchronous>, transform_indices = @transform_4, window_bounds = array<i64: 1, 64>}, {pipeline_mode = #tpu.pipeline_mode<synchronous>, transform_indices = @transform_5, window_bounds = array<i64: 64, 128>}, {pipeline_mode = #tpu.pipeline_mode<synchronous>, transform_indices = @transform_6, window_bounds = array<i64: 1, 128>}, {pipeline_mode = #tpu.pipeline_mode<synchronous>, transform_indices = @transform_7, window_bounds = array<i64: 32, 32>}, {pipeline_mode = #tpu.pipeline_mode<synchronous>, transform_indices = @transform_8, window_bounds = array<i64: 1, 32>}, {pipeline_mode = #tpu.pipeline_mode<synchronous>, transform_indices = @transform_9, window_bounds = array<i64: 32, 64>}, {pipeline_mode = #tpu.pipeline_mode<synchronous>, transform_indices = @transform_10, window_bounds = array<i64: 1, 64>}, {pipeline_mode = #tpu.pipeline_mode<synchronous>, transform_indices = @transform_11, window_bounds = array<i64: 64, 64>}, {pipeline_mode = #tpu.pipeline_mode<synchronous>, transform_indices = @transform_12, window_bounds = array<i64: 1, 64>}, {pipeline_mode = #tpu.pipeline_mode<synchronous>, transform_indices = @transform_13, window_bounds = array<i64: 1, 64>}, {pipeline_mode = #tpu.pipeline_mode<synchronous>, transform_indices = @transform_14, window_bounds = array<i64: 1, 64>}, {pipeline_mode = #tpu.pipeline_mode<synchronous>, transform_indices = @transform_15, window_bounds = array<i64: 32, 32>}, {pipeline_mode = #tpu.pipeline_mode<synchronous>, transform_indices = @transform_16, window_bounds = array<i64: 1, 32>}, {pipeline_mode = #tpu.pipeline_mode<synchronous>, transform_indices = @transform_17, window_bounds = array<i64: 1, 32>}, {pipeline_mode = #tpu.pipeline_mode<synchronous>, transform_indices = @transform_18, window_bounds = array<i64: 1, 32>}, {transform_indices = @transform_19, window_bounds = array<i64: 1, 8, 64>}, {transform_indices = @transform_20, window_bounds = array<i64: 1, 8, 32>}]} {
    %c0_i32 = arith.constant 0 : i32
    %0 = arith.cmpi eq, %arg1, %c0_i32 : i32
    %1 = arith.extui %0 : i1 to i32
    %c0_i32_0 = arith.constant 0 : i32
    %2 = arith.cmpi ne, %1, %c0_i32_0 : i32
    scf.if %2 {
      %c0_150 = arith.constant 0 : index
      %c0_151 = arith.constant 0 : index
      %c0_152 = arith.constant 0 : index
      %219 = vector.load %arg2[%c0_150, %c0_151, %c0_152] : memref<1x8x64xf32, #tpu.memory_space<vmem>>, vector<1x8x64xf32>
      %220 = vector.shape_cast %219 : vector<1x8x64xf32> to vector<8x64xf32>
      %221 = arith.truncf %220 : vector<8x64xf32> to vector<8x64xbf16>
      %c0_153 = arith.constant 0 : index
      %c0_154 = arith.constant 0 : index
      %222 = vector.load %arg7[%c0_153, %c0_154] : memref<64x128xbf16, #tpu.memory_space<vmem>>, vector<64x128xbf16>
      %cst_155 = arith.constant dense<0.000000e+00> : vector<8x128xf32>
      %223 = tpu.matmul %221, %222, %cst_155 {dimension_numbers = #tpu.dot_dimension_numbers<[1], [0], [0], [1], [0, 0, 1, 1], [], []>} : vector<8x64xbf16>, vector<64x128xbf16>, vector<8x128xf32> -> vector<8x128xf32>
      %c0_156 = arith.constant 0 : index
      %c0_157 = arith.constant 0 : index
      %224 = vector.load %arg8[%c0_156, %c0_157] : memref<1x128xf32, #tpu.memory_space<vmem>>, vector<1x128xf32>
      %225 = vector.broadcast %224 : vector<1x128xf32> to vector<8x128xf32>
      %226 = arith.addf %223, %225 : vector<8x128xf32>
      %227 = vector.extract_strided_slice %226 {offsets = [0, 0], sizes = [8, 64], strides = [1, 1]} : vector<8x128xf32> to vector<8x64xf32>
      %228 = arith.truncf %227 : vector<8x64xf32> to vector<8x64xbf16>
      %c0_158 = arith.constant 0 : index
      %c0_159 = arith.constant 0 : index
      %229 = vector.load %arg23[%c0_158, %c0_159] : memref<8x64xbf16, #tpu.memory_space<vmem>>, vector<8x64xbf16>
      tpu.vector_store %arg23[%c0_158, %c0_159], %228 {strides = array<i32>} : memref<8x64xbf16, #tpu.memory_space<vmem>>, vector<8x64xbf16>,
      %230 = vector.extract_strided_slice %226 {offsets = [0, 64], sizes = [8, 64], strides = [1, 1]} : vector<8x128xf32> to vector<8x64xf32>
      %231 = arith.truncf %230 : vector<8x64xf32> to vector<8x64xbf16>
      %c0_160 = arith.constant 0 : index
      %c0_161 = arith.constant 0 : index
      %232 = vector.load %arg24[%c0_160, %c0_161] : memref<8x64xbf16, #tpu.memory_space<vmem>>, vector<8x64xbf16>
      tpu.vector_store %arg24[%c0_160, %c0_161], %231 {strides = array<i32>} : memref<8x64xbf16, #tpu.memory_space<vmem>>, vector<8x64xbf16>,
      %c0_162 = arith.constant 0 : index
      %c0_163 = arith.constant 0 : index
      %c0_164 = arith.constant 0 : index
      %233 = vector.load %arg3[%c0_162, %c0_163, %c0_164] : memref<1x8x32xf32, #tpu.memory_space<vmem>>, vector<1x8x32xf32>
      %234 = vector.shape_cast %233 : vector<1x8x32xf32> to vector<8x32xf32>
      %235 = arith.truncf %234 : vector<8x32xf32> to vector<8x32xbf16>
      %c0_165 = arith.constant 0 : index
      %c0_166 = arith.constant 0 : index
      %236 = vector.load %arg11[%c0_165, %c0_166] : memref<32x64xbf16, #tpu.memory_space<vmem>>, vector<32x64xbf16>
      %cst_167 = arith.constant dense<0.000000e+00> : vector<8x64xf32>
      %237 = tpu.matmul %235, %236, %cst_167 {dimension_numbers = #tpu.dot_dimension_numbers<[1], [0], [0], [1], [0, 0, 1, 1], [], []>} : vector<8x32xbf16>, vector<32x64xbf16>, vector<8x64xf32> -> vector<8x64xf32>
      %c0_168 = arith.constant 0 : index
      %c0_169 = arith.constant 0 : index
      %238 = vector.load %arg12[%c0_168, %c0_169] : memref<1x64xf32, #tpu.memory_space<vmem>>, vector<1x64xf32>
      %239 = vector.broadcast %238 : vector<1x64xf32> to vector<8x64xf32>
      %240 = arith.addf %237, %239 : vector<8x64xf32>
      %241 = vector.extract_strided_slice %240 {offsets = [0, 0], sizes = [8, 32], strides = [1, 1]} : vector<8x64xf32> to vector<8x32xf32>
      %242 = arith.truncf %241 : vector<8x32xf32> to vector<8x32xbf16>
      %c0_170 = arith.constant 0 : index
      %c0_171 = arith.constant 0 : index
      %243 = vector.load %arg25[%c0_170, %c0_171] : memref<8x32xbf16, #tpu.memory_space<vmem>>, vector<8x32xbf16>
      tpu.vector_store %arg25[%c0_170, %c0_171], %242 {strides = array<i32>} : memref<8x32xbf16, #tpu.memory_space<vmem>>, vector<8x32xbf16>,
      %244 = vector.extract_strided_slice %240 {offsets = [0, 32], sizes = [8, 32], strides = [1, 1]} : vector<8x64xf32> to vector<8x32xf32>
      %245 = arith.truncf %244 : vector<8x32xf32> to vector<8x32xbf16>
      %c0_172 = arith.constant 0 : index
      %c0_173 = arith.constant 0 : index
      %246 = vector.load %arg26[%c0_172, %c0_173] : memref<8x32xbf16, #tpu.memory_space<vmem>>, vector<8x32xbf16>
      tpu.vector_store %arg26[%c0_172, %c0_173], %245 {strides = array<i32>} : memref<8x32xbf16, #tpu.memory_space<vmem>>, vector<8x32xbf16>,
    } else {
    }
    %c8_i32 = arith.constant 8 : i32
    %3 = arith.muli %arg1, %c8_i32 : i32
    %4 = tpu.assume_multiple %3, 8 : i32
    %c0 = arith.constant 0 : index
    %5 = arith.index_cast %4 : i32 to index
    %c0_1 = arith.constant 0 : index
    %6 = vector.load %arg2[%c0, %5, %c0_1] : memref<1x8x64xf32, #tpu.memory_space<vmem>>, vector<1x8x64xf32>
    %7 = vector.shape_cast %6 : vector<1x8x64xf32> to vector<8x64xf32>
    %c0_2 = arith.constant 0 : index
    %8 = arith.index_cast %4 : i32 to index
    %c0_3 = arith.constant 0 : index
    %9 = vector.load %arg3[%c0_2, %8, %c0_3] : memref<1x8x32xf32, #tpu.memory_space<vmem>>, vector<1x8x32xf32>
    %10 = vector.shape_cast %9 : vector<1x8x32xf32> to vector<8x32xf32>
    %11 = arith.truncf %7 : vector<8x64xf32> to vector<8x64xbf16>
    %c0_4 = arith.constant 0 : index
    %c0_5 = arith.constant 0 : index
    %12 = vector.load %arg5[%c0_4, %c0_5] : memref<64x64xbf16, #tpu.memory_space<vmem>>, vector<64x64xbf16>
    %cst = arith.constant dense<0.000000e+00> : vector<8x64xf32>
    %13 = tpu.matmul %11, %12, %cst {dimension_numbers = #tpu.dot_dimension_numbers<[1], [0], [0], [1], [0, 0, 1, 1], [], []>} : vector<8x64xbf16>, vector<64x64xbf16>, vector<8x64xf32> -> vector<8x64xf32>
    %c0_6 = arith.constant 0 : index
    %c0_7 = arith.constant 0 : index
    %14 = vector.load %arg6[%c0_6, %c0_7] : memref<1x64xf32, #tpu.memory_space<vmem>>, vector<1x64xf32>
    %15 = vector.broadcast %14 : vector<1x64xf32> to vector<8x64xf32>
    %16 = arith.addf %13, %15 : vector<8x64xf32>
    %17 = arith.truncf %16 : vector<8x64xf32> to vector<8x64xbf16>
    %c0_8 = arith.constant 0 : index
    %c0_9 = arith.constant 0 : index
    %18 = vector.load %arg27[%c0_8, %c0_9] : memref<8x64xbf16, #tpu.memory_space<vmem>>, vector<8x64xbf16>
    tpu.vector_store %arg27[%c0_8, %c0_9], %17 {strides = array<i32>} : memref<8x64xbf16, #tpu.memory_space<vmem>>, vector<8x64xbf16>,
    %19 = arith.truncf %10 : vector<8x32xf32> to vector<8x32xbf16>
    %c0_10 = arith.constant 0 : index
    %c0_11 = arith.constant 0 : index
    %20 = vector.load %arg9[%c0_10, %c0_11] : memref<32x32xbf16, #tpu.memory_space<vmem>>, vector<32x32xbf16>
    %cst_12 = arith.constant dense<0.000000e+00> : vector<8x32xf32>
    %21 = tpu.matmul %19, %20, %cst_12 {dimension_numbers = #tpu.dot_dimension_numbers<[1], [0], [0], [1], [0, 0, 1, 1], [], []>} : vector<8x32xbf16>, vector<32x32xbf16>, vector<8x32xf32> -> vector<8x32xf32>
    %c0_13 = arith.constant 0 : index
    %c0_14 = arith.constant 0 : index
    %22 = vector.load %arg10[%c0_13, %c0_14] : memref<1x32xf32, #tpu.memory_space<vmem>>, vector<1x32xf32>
    %23 = vector.broadcast %22 : vector<1x32xf32> to vector<8x32xf32>
    %24 = arith.addf %21, %23 : vector<8x32xf32>
    %25 = arith.truncf %24 : vector<8x32xf32> to vector<8x32xbf16>
    %c0_15 = arith.constant 0 : index
    %c0_16 = arith.constant 0 : index
    %26 = vector.load %arg28[%c0_15, %c0_16] : memref<8x32xbf16, #tpu.memory_space<vmem>>, vector<8x32xbf16>
    tpu.vector_store %arg28[%c0_15, %c0_16], %25 {strides = array<i32>} : memref<8x32xbf16, #tpu.memory_space<vmem>>, vector<8x32xbf16>,
    %c0_17 = arith.constant 0 : index
    %c0_18 = arith.constant 0 : index
    %c0_19 = arith.constant 0 : index
    %c0_20 = arith.constant 0 : index
    %27 = vector.load %arg4[%c0_17, %c0_18, %c0_19, %c0_20] : memref<1x1x1x8xf32, #tpu.memory_space<vmem>>, vector<1x1x1x8xf32>
    %28 = vector.shape_cast %27 : vector<1x1x1x8xf32> to vector<1x8xf32>
    %29 = vector.shape_cast %28 : vector<1x8xf32> to vector<1x8xf32>
    %30 = vector.broadcast %29 : vector<1x8xf32> to vector<8x8xf32>
    %c0_21 = arith.constant 0 : index
    %c0_22 = arith.constant 0 : index
    %31 = vector.load %arg27[%c0_21, %c0_22] : memref<8x64xbf16, #tpu.memory_space<vmem>>, vector<8x16xbf16>
    %c0_23 = arith.constant 0 : index
    %c0_24 = arith.constant 0 : index
    %32 = vector.load %arg23[%c0_23, %c0_24] : memref<8x64xbf16, #tpu.memory_space<vmem>>, vector<8x16xbf16>
    %c0_25 = arith.constant 0 : index
    %c0_26 = arith.constant 0 : index
    %33 = vector.load %arg28[%c0_25, %c0_26] : memref<8x32xbf16, #tpu.memory_space<vmem>>, vector<8x8xbf16>
    %c0_27 = arith.constant 0 : index
    %c0_28 = arith.constant 0 : index
    %34 = vector.load %arg25[%c0_27, %c0_28] : memref<8x32xbf16, #tpu.memory_space<vmem>>, vector<8x8xbf16>
    %cst_29 = arith.constant dense<0.000000e+00> : vector<8x8xf32>
    %35 = tpu.matmul %31, %32, %cst_29 {dimension_numbers = #tpu.dot_dimension_numbers<[1], [1], [0], [0], [0, 0, 1, 0], [], []>} : vector<8x16xbf16>, vector<8x16xbf16>, vector<8x8xf32> -> vector<8x8xf32>
    %cst_30 = arith.constant 2.500000e-01 : f32
    %36 = vector.broadcast %cst_30 : f32 to vector<8x8xf32>
    %37 = arith.mulf %35, %36 : vector<8x8xf32>
    %cst_31 = arith.constant dense<0.000000e+00> : vector<8x8xf32>
    %38 = tpu.matmul %33, %34, %cst_31 {dimension_numbers = #tpu.dot_dimension_numbers<[1], [1], [0], [0], [0, 0, 1, 0], [], []>} : vector<8x8xbf16>, vector<8x8xbf16>, vector<8x8xf32> -> vector<8x8xf32>
    %cst_32 = arith.constant 0.353553385 : f32
    %39 = vector.broadcast %cst_32 : f32 to vector<8x8xf32>
    %40 = arith.mulf %38, %39 : vector<8x8xf32>
    %41 = arith.addf %37, %40 : vector<8x8xf32>
    %42 = arith.addf %41, %30 : vector<8x8xf32>
    %cst_33 = arith.constant dense<0xFF800000> : vector<8xf32>
    %43 = vector.multi_reduction <maximumf>, %42, %cst_33 [1] : vector<8x8xf32> to vector<8xf32>
    %44 = vector.shape_cast %43 : vector<8xf32> to vector<8x1xf32>
    %45 = vector.broadcast %44 : vector<8x1xf32> to vector<8x8xf32>
    %46 = arith.subf %42, %45 : vector<8x8xf32>
    %47 = math.exp %46 : vector<8x8xf32>
    %cst_34 = arith.constant dense<0.000000e+00> : vector<8xf32>
    %48 = vector.multi_reduction <add>, %47, %cst_34 [1] : vector<8x8xf32> to vector<8xf32>
    %49 = vector.shape_cast %48 : vector<8xf32> to vector<8x1xf32>
    %50 = tpu.reciprocal %49 {approx = true} : vector<8x1xf32> -> vector<8x1xf32>
    %51 = vector.broadcast %50 : vector<8x1xf32> to vector<8x8xf32>
    %52 = arith.mulf %47, %51 : vector<8x8xf32>
    %53 = arith.truncf %52 : vector<8x8xf32> to vector<8x8xbf16>
    %c0_35 = arith.constant 0 : index
    %c0_36 = arith.constant 0 : index
    %54 = vector.load %arg24[%c0_35, %c0_36] : memref<8x64xbf16, #tpu.memory_space<vmem>>, vector<8x16xbf16>
    %cst_37 = arith.constant dense<0.000000e+00> : vector<8x16xf32>
    %55 = tpu.matmul %53, %54, %cst_37 {dimension_numbers = #tpu.dot_dimension_numbers<[1], [0], [0], [1], [0, 0, 1, 1], [], []>} : vector<8x8xbf16>, vector<8x16xbf16>, vector<8x16xf32> -> vector<8x16xf32>
    %56 = arith.truncf %55 : vector<8x16xf32> to vector<8x16xbf16>
    %c0_38 = arith.constant 0 : index
    %c0_39 = arith.constant 0 : index
    %57 = vector.load %arg29[%c0_38, %c0_39] : memref<8x64xbf16, #tpu.memory_space<vmem>>, vector<8x16xbf16>
    tpu.vector_store %arg29[%c0_38, %c0_39], %56 {strides = array<i32>} : memref<8x64xbf16, #tpu.memory_space<vmem>>, vector<8x16xbf16>,
    %c0_40 = arith.constant 0 : index
    %c0_41 = arith.constant 0 : index
    %58 = vector.load %arg26[%c0_40, %c0_41] : memref<8x32xbf16, #tpu.memory_space<vmem>>, vector<8x8xbf16>
    %cst_42 = arith.constant dense<0.000000e+00> : vector<8x8xf32>
    %59 = tpu.matmul %53, %58, %cst_42 {dimension_numbers = #tpu.dot_dimension_numbers<[1], [0], [0], [1], [0, 0, 1, 1], [], []>} : vector<8x8xbf16>, vector<8x8xbf16>, vector<8x8xf32> -> vector<8x8xf32>
    %60 = arith.truncf %59 : vector<8x8xf32> to vector<8x8xbf16>
    %c0_43 = arith.constant 0 : index
    %c0_44 = arith.constant 0 : index
    %61 = vector.load %arg30[%c0_43, %c0_44] : memref<8x32xbf16, #tpu.memory_space<vmem>>, vector<8x8xbf16>
    tpu.vector_store %arg30[%c0_43, %c0_44], %60 {strides = array<i32>} : memref<8x32xbf16, #tpu.memory_space<vmem>>, vector<8x8xbf16>,
    %c0_45 = arith.constant 0 : index
    %c16 = arith.constant 16 : index
    %62 = vector.load %arg27[%c0_45, %c16] : memref<8x64xbf16, #tpu.memory_space<vmem>>, vector<8x16xbf16>
    %c0_46 = arith.constant 0 : index
    %c16_47 = arith.constant 16 : index
    %63 = vector.load %arg23[%c0_46, %c16_47] : memref<8x64xbf16, #tpu.memory_space<vmem>>, vector<8x16xbf16>
    %c0_48 = arith.constant 0 : index
    %c8 = arith.constant 8 : index
    %64 = vector.load %arg28[%c0_48, %c8] : memref<8x32xbf16, #tpu.memory_space<vmem>>, vector<8x8xbf16>
    %c0_49 = arith.constant 0 : index
    %c8_50 = arith.constant 8 : index
    %65 = vector.load %arg25[%c0_49, %c8_50] : memref<8x32xbf16, #tpu.memory_space<vmem>>, vector<8x8xbf16>
    %cst_51 = arith.constant dense<0.000000e+00> : vector<8x8xf32>
    %66 = tpu.matmul %62, %63, %cst_51 {dimension_numbers = #tpu.dot_dimension_numbers<[1], [1], [0], [0], [0, 0, 1, 0], [], []>} : vector<8x16xbf16>, vector<8x16xbf16>, vector<8x8xf32> -> vector<8x8xf32>
    %cst_52 = arith.constant 2.500000e-01 : f32
    %67 = vector.broadcast %cst_52 : f32 to vector<8x8xf32>
    %68 = arith.mulf %66, %67 : vector<8x8xf32>
    %cst_53 = arith.constant dense<0.000000e+00> : vector<8x8xf32>
    %69 = tpu.matmul %64, %65, %cst_53 {dimension_numbers = #tpu.dot_dimension_numbers<[1], [1], [0], [0], [0, 0, 1, 0], [], []>} : vector<8x8xbf16>, vector<8x8xbf16>, vector<8x8xf32> -> vector<8x8xf32>
    %cst_54 = arith.constant 0.353553385 : f32
    %70 = vector.broadcast %cst_54 : f32 to vector<8x8xf32>
    %71 = arith.mulf %69, %70 : vector<8x8xf32>
    %72 = arith.addf %68, %71 : vector<8x8xf32>
    %73 = arith.addf %72, %30 : vector<8x8xf32>
    %cst_55 = arith.constant dense<0xFF800000> : vector<8xf32>
    %74 = vector.multi_reduction <maximumf>, %73, %cst_55 [1] : vector<8x8xf32> to vector<8xf32>
    %75 = vector.shape_cast %74 : vector<8xf32> to vector<8x1xf32>
    %76 = vector.broadcast %75 : vector<8x1xf32> to vector<8x8xf32>
    %77 = arith.subf %73, %76 : vector<8x8xf32>
    %78 = math.exp %77 : vector<8x8xf32>
    %cst_56 = arith.constant dense<0.000000e+00> : vector<8xf32>
    %79 = vector.multi_reduction <add>, %78, %cst_56 [1] : vector<8x8xf32> to vector<8xf32>
    %80 = vector.shape_cast %79 : vector<8xf32> to vector<8x1xf32>
    %81 = tpu.reciprocal %80 {approx = true} : vector<8x1xf32> -> vector<8x1xf32>
    %82 = vector.broadcast %81 : vector<8x1xf32> to vector<8x8xf32>
    %83 = arith.mulf %78, %82 : vector<8x8xf32>
    %84 = arith.truncf %83 : vector<8x8xf32> to vector<8x8xbf16>
    %c0_57 = arith.constant 0 : index
    %c16_58 = arith.constant 16 : index
    %85 = vector.load %arg24[%c0_57, %c16_58] : memref<8x64xbf16, #tpu.memory_space<vmem>>, vector<8x16xbf16>
    %cst_59 = arith.constant dense<0.000000e+00> : vector<8x16xf32>
    %86 = tpu.matmul %84, %85, %cst_59 {dimension_numbers = #tpu.dot_dimension_numbers<[1], [0], [0], [1], [0, 0, 1, 1], [], []>} : vector<8x8xbf16>, vector<8x16xbf16>, vector<8x16xf32> -> vector<8x16xf32>
    %87 = arith.truncf %86 : vector<8x16xf32> to vector<8x16xbf16>
    %c0_60 = arith.constant 0 : index
    %c16_61 = arith.constant 16 : index
    %88 = vector.load %arg29[%c0_60, %c16_61] : memref<8x64xbf16, #tpu.memory_space<vmem>>, vector<8x16xbf16>
    tpu.vector_store %arg29[%c0_60, %c16_61], %87 {strides = array<i32>} : memref<8x64xbf16, #tpu.memory_space<vmem>>, vector<8x16xbf16>,
    %c0_62 = arith.constant 0 : index
    %c8_63 = arith.constant 8 : index
    %89 = vector.load %arg26[%c0_62, %c8_63] : memref<8x32xbf16, #tpu.memory_space<vmem>>, vector<8x8xbf16>
    %cst_64 = arith.constant dense<0.000000e+00> : vector<8x8xf32>
    %90 = tpu.matmul %84, %89, %cst_64 {dimension_numbers = #tpu.dot_dimension_numbers<[1], [0], [0], [1], [0, 0, 1, 1], [], []>} : vector<8x8xbf16>, vector<8x8xbf16>, vector<8x8xf32> -> vector<8x8xf32>
    %91 = arith.truncf %90 : vector<8x8xf32> to vector<8x8xbf16>
    %c0_65 = arith.constant 0 : index
    %c8_66 = arith.constant 8 : index
    %92 = vector.load %arg30[%c0_65, %c8_66] : memref<8x32xbf16, #tpu.memory_space<vmem>>, vector<8x8xbf16>
    tpu.vector_store %arg30[%c0_65, %c8_66], %91 {strides = array<i32>} : memref<8x32xbf16, #tpu.memory_space<vmem>>, vector<8x8xbf16>,
    %c0_67 = arith.constant 0 : index
    %c32 = arith.constant 32 : index
    %93 = vector.load %arg27[%c0_67, %c32] : memref<8x64xbf16, #tpu.memory_space<vmem>>, vector<8x16xbf16>
    %c0_68 = arith.constant 0 : index
    %c32_69 = arith.constant 32 : index
    %94 = vector.load %arg23[%c0_68, %c32_69] : memref<8x64xbf16, #tpu.memory_space<vmem>>, vector<8x16xbf16>
    %c0_70 = arith.constant 0 : index
    %c16_71 = arith.constant 16 : index
    %95 = vector.load %arg28[%c0_70, %c16_71] : memref<8x32xbf16, #tpu.memory_space<vmem>>, vector<8x8xbf16>
    %c0_72 = arith.constant 0 : index
    %c16_73 = arith.constant 16 : index
    %96 = vector.load %arg25[%c0_72, %c16_73] : memref<8x32xbf16, #tpu.memory_space<vmem>>, vector<8x8xbf16>
    %cst_74 = arith.constant dense<0.000000e+00> : vector<8x8xf32>
    %97 = tpu.matmul %93, %94, %cst_74 {dimension_numbers = #tpu.dot_dimension_numbers<[1], [1], [0], [0], [0, 0, 1, 0], [], []>} : vector<8x16xbf16>, vector<8x16xbf16>, vector<8x8xf32> -> vector<8x8xf32>
    %cst_75 = arith.constant 2.500000e-01 : f32
    %98 = vector.broadcast %cst_75 : f32 to vector<8x8xf32>
    %99 = arith.mulf %97, %98 : vector<8x8xf32>
    %cst_76 = arith.constant dense<0.000000e+00> : vector<8x8xf32>
    %100 = tpu.matmul %95, %96, %cst_76 {dimension_numbers = #tpu.dot_dimension_numbers<[1], [1], [0], [0], [0, 0, 1, 0], [], []>} : vector<8x8xbf16>, vector<8x8xbf16>, vector<8x8xf32> -> vector<8x8xf32>
    %cst_77 = arith.constant 0.353553385 : f32
    %101 = vector.broadcast %cst_77 : f32 to vector<8x8xf32>
    %102 = arith.mulf %100, %101 : vector<8x8xf32>
    %103 = arith.addf %99, %102 : vector<8x8xf32>
    %104 = arith.addf %103, %30 : vector<8x8xf32>
    %cst_78 = arith.constant dense<0xFF800000> : vector<8xf32>
    %105 = vector.multi_reduction <maximumf>, %104, %cst_78 [1] : vector<8x8xf32> to vector<8xf32>
    %106 = vector.shape_cast %105 : vector<8xf32> to vector<8x1xf32>
    %107 = vector.broadcast %106 : vector<8x1xf32> to vector<8x8xf32>
    %108 = arith.subf %104, %107 : vector<8x8xf32>
    %109 = math.exp %108 : vector<8x8xf32>
    %cst_79 = arith.constant dense<0.000000e+00> : vector<8xf32>
    %110 = vector.multi_reduction <add>, %109, %cst_79 [1] : vector<8x8xf32> to vector<8xf32>
    %111 = vector.shape_cast %110 : vector<8xf32> to vector<8x1xf32>
    %112 = tpu.reciprocal %111 {approx = true} : vector<8x1xf32> -> vector<8x1xf32>
    %113 = vector.broadcast %112 : vector<8x1xf32> to vector<8x8xf32>
    %114 = arith.mulf %109, %113 : vector<8x8xf32>
    %115 = arith.truncf %114 : vector<8x8xf32> to vector<8x8xbf16>
    %c0_80 = arith.constant 0 : index
    %c32_81 = arith.constant 32 : index
    %116 = vector.load %arg24[%c0_80, %c32_81] : memref<8x64xbf16, #tpu.memory_space<vmem>>, vector<8x16xbf16>
    %cst_82 = arith.constant dense<0.000000e+00> : vector<8x16xf32>
    %117 = tpu.matmul %115, %116, %cst_82 {dimension_numbers = #tpu.dot_dimension_numbers<[1], [0], [0], [1], [0, 0, 1, 1], [], []>} : vector<8x8xbf16>, vector<8x16xbf16>, vector<8x16xf32> -> vector<8x16xf32>
    %118 = arith.truncf %117 : vector<8x16xf32> to vector<8x16xbf16>
    %c0_83 = arith.constant 0 : index
    %c32_84 = arith.constant 32 : index
    %119 = vector.load %arg29[%c0_83, %c32_84] : memref<8x64xbf16, #tpu.memory_space<vmem>>, vector<8x16xbf16>
    tpu.vector_store %arg29[%c0_83, %c32_84], %118 {strides = array<i32>} : memref<8x64xbf16, #tpu.memory_space<vmem>>, vector<8x16xbf16>,
    %c0_85 = arith.constant 0 : index
    %c16_86 = arith.constant 16 : index
    %120 = vector.load %arg26[%c0_85, %c16_86] : memref<8x32xbf16, #tpu.memory_space<vmem>>, vector<8x8xbf16>
    %cst_87 = arith.constant dense<0.000000e+00> : vector<8x8xf32>
    %121 = tpu.matmul %115, %120, %cst_87 {dimension_numbers = #tpu.dot_dimension_numbers<[1], [0], [0], [1], [0, 0, 1, 1], [], []>} : vector<8x8xbf16>, vector<8x8xbf16>, vector<8x8xf32> -> vector<8x8xf32>
    %122 = arith.truncf %121 : vector<8x8xf32> to vector<8x8xbf16>
    %c0_88 = arith.constant 0 : index
    %c16_89 = arith.constant 16 : index
    %123 = vector.load %arg30[%c0_88, %c16_89] : memref<8x32xbf16, #tpu.memory_space<vmem>>, vector<8x8xbf16>
    tpu.vector_store %arg30[%c0_88, %c16_89], %122 {strides = array<i32>} : memref<8x32xbf16, #tpu.memory_space<vmem>>, vector<8x8xbf16>,
    %c0_90 = arith.constant 0 : index
    %c48 = arith.constant 48 : index
    %124 = vector.load %arg27[%c0_90, %c48] : memref<8x64xbf16, #tpu.memory_space<vmem>>, vector<8x16xbf16>
    %c0_91 = arith.constant 0 : index
    %c48_92 = arith.constant 48 : index
    %125 = vector.load %arg23[%c0_91, %c48_92] : memref<8x64xbf16, #tpu.memory_space<vmem>>, vector<8x16xbf16>
    %c0_93 = arith.constant 0 : index
    %c24 = arith.constant 24 : index
    %126 = vector.load %arg28[%c0_93, %c24] : memref<8x32xbf16, #tpu.memory_space<vmem>>, vector<8x8xbf16>
    %c0_94 = arith.constant 0 : index
    %c24_95 = arith.constant 24 : index
    %127 = vector.load %arg25[%c0_94, %c24_95] : memref<8x32xbf16, #tpu.memory_space<vmem>>, vector<8x8xbf16>
    %cst_96 = arith.constant dense<0.000000e+00> : vector<8x8xf32>
    %128 = tpu.matmul %124, %125, %cst_96 {dimension_numbers = #tpu.dot_dimension_numbers<[1], [1], [0], [0], [0, 0, 1, 0], [], []>} : vector<8x16xbf16>, vector<8x16xbf16>, vector<8x8xf32> -> vector<8x8xf32>
    %cst_97 = arith.constant 2.500000e-01 : f32
    %129 = vector.broadcast %cst_97 : f32 to vector<8x8xf32>
    %130 = arith.mulf %128, %129 : vector<8x8xf32>
    %cst_98 = arith.constant dense<0.000000e+00> : vector<8x8xf32>
    %131 = tpu.matmul %126, %127, %cst_98 {dimension_numbers = #tpu.dot_dimension_numbers<[1], [1], [0], [0], [0, 0, 1, 0], [], []>} : vector<8x8xbf16>, vector<8x8xbf16>, vector<8x8xf32> -> vector<8x8xf32>
    %cst_99 = arith.constant 0.353553385 : f32
    %132 = vector.broadcast %cst_99 : f32 to vector<8x8xf32>
    %133 = arith.mulf %131, %132 : vector<8x8xf32>
    %134 = arith.addf %130, %133 : vector<8x8xf32>
    %135 = arith.addf %134, %30 : vector<8x8xf32>
    %cst_100 = arith.constant dense<0xFF800000> : vector<8xf32>
    %136 = vector.multi_reduction <maximumf>, %135, %cst_100 [1] : vector<8x8xf32> to vector<8xf32>
    %137 = vector.shape_cast %136 : vector<8xf32> to vector<8x1xf32>
    %138 = vector.broadcast %137 : vector<8x1xf32> to vector<8x8xf32>
    %139 = arith.subf %135, %138 : vector<8x8xf32>
    %140 = math.exp %139 : vector<8x8xf32>
    %cst_101 = arith.constant dense<0.000000e+00> : vector<8xf32>
    %141 = vector.multi_reduction <add>, %140, %cst_101 [1] : vector<8x8xf32> to vector<8xf32>
    %142 = vector.shape_cast %141 : vector<8xf32> to vector<8x1xf32>
    %143 = tpu.reciprocal %142 {approx = true} : vector<8x1xf32> -> vector<8x1xf32>
    %144 = vector.broadcast %143 : vector<8x1xf32> to vector<8x8xf32>
    %145 = arith.mulf %140, %144 : vector<8x8xf32>
    %146 = arith.truncf %145 : vector<8x8xf32> to vector<8x8xbf16>
    %c0_102 = arith.constant 0 : index
    %c48_103 = arith.constant 48 : index
    %147 = vector.load %arg24[%c0_102, %c48_103] : memref<8x64xbf16, #tpu.memory_space<vmem>>, vector<8x16xbf16>
    %cst_104 = arith.constant dense<0.000000e+00> : vector<8x16xf32>
    %148 = tpu.matmul %146, %147, %cst_104 {dimension_numbers = #tpu.dot_dimension_numbers<[1], [0], [0], [1], [0, 0, 1, 1], [], []>} : vector<8x8xbf16>, vector<8x16xbf16>, vector<8x16xf32> -> vector<8x16xf32>
    %149 = arith.truncf %148 : vector<8x16xf32> to vector<8x16xbf16>
    %c0_105 = arith.constant 0 : index
    %c48_106 = arith.constant 48 : index
    %150 = vector.load %arg29[%c0_105, %c48_106] : memref<8x64xbf16, #tpu.memory_space<vmem>>, vector<8x16xbf16>
    tpu.vector_store %arg29[%c0_105, %c48_106], %149 {strides = array<i32>} : memref<8x64xbf16, #tpu.memory_space<vmem>>, vector<8x16xbf16>,
    %c0_107 = arith.constant 0 : index
    %c24_108 = arith.constant 24 : index
    %151 = vector.load %arg26[%c0_107, %c24_108] : memref<8x32xbf16, #tpu.memory_space<vmem>>, vector<8x8xbf16>
    %cst_109 = arith.constant dense<0.000000e+00> : vector<8x8xf32>
    %152 = tpu.matmul %146, %151, %cst_109 {dimension_numbers = #tpu.dot_dimension_numbers<[1], [0], [0], [1], [0, 0, 1, 1], [], []>} : vector<8x8xbf16>, vector<8x8xbf16>, vector<8x8xf32> -> vector<8x8xf32>
    %153 = arith.truncf %152 : vector<8x8xf32> to vector<8x8xbf16>
    %c0_110 = arith.constant 0 : index
    %c24_111 = arith.constant 24 : index
    %154 = vector.load %arg30[%c0_110, %c24_111] : memref<8x32xbf16, #tpu.memory_space<vmem>>, vector<8x8xbf16>
    tpu.vector_store %arg30[%c0_110, %c24_111], %153 {strides = array<i32>} : memref<8x32xbf16, #tpu.memory_space<vmem>>, vector<8x8xbf16>,
    %c0_112 = arith.constant 0 : index
    %c0_113 = arith.constant 0 : index
    %155 = vector.load %arg29[%c0_112, %c0_113] : memref<8x64xbf16, #tpu.memory_space<vmem>>, vector<8x64xbf16>
    %c0_114 = arith.constant 0 : index
    %c0_115 = arith.constant 0 : index
    %156 = vector.load %arg13[%c0_114, %c0_115] : memref<64x64xbf16, #tpu.memory_space<vmem>>, vector<64x64xbf16>
    %cst_116 = arith.constant dense<0.000000e+00> : vector<8x64xf32>
    %157 = tpu.matmul %155, %156, %cst_116 {dimension_numbers = #tpu.dot_dimension_numbers<[1], [0], [0], [1], [0, 0, 1, 1], [], []>} : vector<8x64xbf16>, vector<64x64xbf16>, vector<8x64xf32> -> vector<8x64xf32>
    %c0_117 = arith.constant 0 : index
    %c0_118 = arith.constant 0 : index
    %158 = vector.load %arg14[%c0_117, %c0_118] : memref<1x64xf32, #tpu.memory_space<vmem>>, vector<1x64xf32>
    %159 = vector.broadcast %158 : vector<1x64xf32> to vector<8x64xf32>
    %160 = arith.addf %157, %159 : vector<8x64xf32>
    %161 = arith.addf %160, %7 : vector<8x64xf32>
    %cst_119 = arith.constant dense<0.000000e+00> : vector<8xf32>
    %162 = vector.multi_reduction <add>, %161, %cst_119 [1] : vector<8x64xf32> to vector<8xf32>
    %163 = vector.shape_cast %162 : vector<8xf32> to vector<8x1xf32>
    %cst_120 = arith.constant 6.400000e+01 : f32
    %164 = vector.broadcast %cst_120 : f32 to vector<8x1xf32>
    %165 = arith.divf %163, %164 : vector<8x1xf32>
    %166 = vector.broadcast %165 : vector<8x1xf32> to vector<8x64xf32>
    %167 = arith.subf %161, %166 : vector<8x64xf32>
    %168 = arith.mulf %167, %167 : vector<8x64xf32>
    %cst_121 = arith.constant dense<0.000000e+00> : vector<8xf32>
    %169 = vector.multi_reduction <add>, %168, %cst_121 [1] : vector<8x64xf32> to vector<8xf32>
    %170 = vector.shape_cast %169 : vector<8xf32> to vector<8x1xf32>
    %cst_122 = arith.constant 6.400000e+01 : f32
    %171 = vector.broadcast %cst_122 : f32 to vector<8x1xf32>
    %172 = arith.divf %170, %171 : vector<8x1xf32>
    %cst_123 = arith.constant 9.99999996E-13 : f32
    %173 = vector.broadcast %cst_123 : f32 to vector<8x1xf32>
    %174 = arith.addf %172, %173 : vector<8x1xf32>
    %175 = math.rsqrt %174 : vector<8x1xf32>
    %176 = vector.broadcast %175 : vector<8x1xf32> to vector<8x64xf32>
    %177 = arith.mulf %167, %176 : vector<8x64xf32>
    %c0_124 = arith.constant 0 : index
    %c0_125 = arith.constant 0 : index
    %178 = vector.load %arg15[%c0_124, %c0_125] : memref<1x64xf32, #tpu.memory_space<vmem>>, vector<1x64xf32>
    %179 = vector.broadcast %178 : vector<1x64xf32> to vector<8x64xf32>
    %180 = arith.mulf %177, %179 : vector<8x64xf32>
    %c0_126 = arith.constant 0 : index
    %c0_127 = arith.constant 0 : index
    %181 = vector.load %arg16[%c0_126, %c0_127] : memref<1x64xf32, #tpu.memory_space<vmem>>, vector<1x64xf32>
    %182 = vector.broadcast %181 : vector<1x64xf32> to vector<8x64xf32>
    %183 = arith.addf %180, %182 : vector<8x64xf32>
    %c0_128 = arith.constant 0 : index
    %c0_129 = arith.constant 0 : index
    %c0_130 = arith.constant 0 : index
    %184 = vector.load %arg21[%c0_128, %c0_129, %c0_130] : memref<1x8x64xf32, #tpu.memory_space<vmem>>, vector<1x8x64xf32>
    %185 = vector.shape_cast %184 : vector<1x8x64xf32> to vector<8x64xf32>
    %186 = vector.shape_cast %183 : vector<8x64xf32> to vector<1x8x64xf32>
    tpu.vector_store %arg21[%c0_128, %c0_129, %c0_130], %186 {strides = array<i32>} : memref<1x8x64xf32, #tpu.memory_space<vmem>>, vector<1x8x64xf32>,
    %c0_131 = arith.constant 0 : index
    %c0_132 = arith.constant 0 : index
    %187 = vector.load %arg30[%c0_131, %c0_132] : memref<8x32xbf16, #tpu.memory_space<vmem>>, vector<8x32xbf16>
    %c0_133 = arith.constant 0 : index
    %c0_134 = arith.constant 0 : index
    %188 = vector.load %arg17[%c0_133, %c0_134] : memref<32x32xbf16, #tpu.memory_space<vmem>>, vector<32x32xbf16>
    %cst_135 = arith.constant dense<0.000000e+00> : vector<8x32xf32>
    %189 = tpu.matmul %187, %188, %cst_135 {dimension_numbers = #tpu.dot_dimension_numbers<[1], [0], [0], [1], [0, 0, 1, 1], [], []>} : vector<8x32xbf16>, vector<32x32xbf16>, vector<8x32xf32> -> vector<8x32xf32>
    %c0_136 = arith.constant 0 : index
    %c0_137 = arith.constant 0 : index
    %190 = vector.load %arg18[%c0_136, %c0_137] : memref<1x32xf32, #tpu.memory_space<vmem>>, vector<1x32xf32>
    %191 = vector.broadcast %190 : vector<1x32xf32> to vector<8x32xf32>
    %192 = arith.addf %189, %191 : vector<8x32xf32>
    %193 = arith.addf %192, %10 : vector<8x32xf32>
    %cst_138 = arith.constant dense<0.000000e+00> : vector<8xf32>
    %194 = vector.multi_reduction <add>, %193, %cst_138 [1] : vector<8x32xf32> to vector<8xf32>
    %195 = vector.shape_cast %194 : vector<8xf32> to vector<8x1xf32>
    %cst_139 = arith.constant 3.200000e+01 : f32
    %196 = vector.broadcast %cst_139 : f32 to vector<8x1xf32>
    %197 = arith.divf %195, %196 : vector<8x1xf32>
    %198 = vector.broadcast %197 : vector<8x1xf32> to vector<8x32xf32>
    %199 = arith.subf %193, %198 : vector<8x32xf32>
    %200 = arith.mulf %199, %199 : vector<8x32xf32>
    %cst_140 = arith.constant dense<0.000000e+00> : vector<8xf32>
    %201 = vector.multi_reduction <add>, %200, %cst_140 [1] : vector<8x32xf32> to vector<8xf32>
    %202 = vector.shape_cast %201 : vector<8xf32> to vector<8x1xf32>
    %cst_141 = arith.constant 3.200000e+01 : f32
    %203 = vector.broadcast %cst_141 : f32 to vector<8x1xf32>
    %204 = arith.divf %202, %203 : vector<8x1xf32>
    %cst_142 = arith.constant 9.99999996E-13 : f32
    %205 = vector.broadcast %cst_142 : f32 to vector<8x1xf32>
    %206 = arith.addf %204, %205 : vector<8x1xf32>
    %207 = math.rsqrt %206 : vector<8x1xf32>
    %208 = vector.broadcast %207 : vector<8x1xf32> to vector<8x32xf32>
    %209 = arith.mulf %199, %208 : vector<8x32xf32>
    %c0_143 = arith.constant 0 : index
    %c0_144 = arith.constant 0 : index
    %210 = vector.load %arg19[%c0_143, %c0_144] : memref<1x32xf32, #tpu.memory_space<vmem>>, vector<1x32xf32>
    %211 = vector.broadcast %210 : vector<1x32xf32> to vector<8x32xf32>
    %212 = arith.mulf %209, %211 : vector<8x32xf32>
    %c0_145 = arith.constant 0 : index
    %c0_146 = arith.constant 0 : index
    %213 = vector.load %arg20[%c0_145, %c0_146] : memref<1x32xf32, #tpu.memory_space<vmem>>, vector<1x32xf32>
    %214 = vector.broadcast %213 : vector<1x32xf32> to vector<8x32xf32>
    %215 = arith.addf %212, %214 : vector<8x32xf32>
    %c0_147 = arith.constant 0 : index
    %c0_148 = arith.constant 0 : index
    %c0_149 = arith.constant 0 : index
    %216 = vector.load %arg22[%c0_147, %c0_148, %c0_149] : memref<1x8x32xf32, #tpu.memory_space<vmem>>, vector<1x8x32xf32>
    %217 = vector.shape_cast %216 : vector<1x8x32xf32> to vector<8x32xf32>
    %218 = vector.shape_cast %215 : vector<8x32xf32> to vector<1x8x32xf32>
    tpu.vector_store %arg22[%c0_147, %c0_148, %c0_149], %218 {strides = array<i32>} : memref<1x8x32xf32, #tpu.memory_space<vmem>>, vector<1x8x32xf32>,
    return
  }
  func.func @transform_0(%arg0: i32, %arg1: i32) -> (i32, i32, i32) {
    %c0_i32 = arith.constant 0 : i32
    %c0_i32_0 = arith.constant 0 : i32
    %c0_i32_1 = arith.constant 0 : i32
    return %arg0, %c0_i32, %c0_i32_0 : i32, i32, i32
  }
  func.func @transform_1(%arg0: i32, %arg1: i32) -> (i32, i32, i32) {
    %c0_i32 = arith.constant 0 : i32
    %c0_i32_0 = arith.constant 0 : i32
    %c0_i32_1 = arith.constant 0 : i32
    return %arg0, %c0_i32, %c0_i32_0 : i32, i32, i32
  }
  func.func @transform_2(%arg0: i32, %arg1: i32) -> (i32, i32, i32, i32) {
    %c0_i32 = arith.constant 0 : i32
    %c0_i32_0 = arith.constant 0 : i32
    %c0_i32_1 = arith.constant 0 : i32
    %c0_i32_2 = arith.constant 0 : i32
    return %arg0, %c0_i32, %c0_i32_0, %c0_i32_1 : i32, i32, i32, i32
  }
  func.func @transform_3(%arg0: i32, %arg1: i32) -> (i32, i32) {
    %c0_i32 = arith.constant 0 : i32
    %c0_i32_0 = arith.constant 0 : i32
    %c0_i32_1 = arith.constant 0 : i32
    return %c0_i32, %c0_i32_0 : i32, i32
  }
  func.func @transform_4(%arg0: i32, %arg1: i32) -> (i32, i32) {
    %c0_i32 = arith.constant 0 : i32
    %c0_i32_0 = arith.constant 0 : i32
    %c0_i32_1 = arith.constant 0 : i32
    return %c0_i32, %c0_i32_0 : i32, i32
  }
  func.func @transform_5(%arg0: i32, %arg1: i32) -> (i32, i32) {
    %c0_i32 = arith.constant 0 : i32
    %c0_i32_0 = arith.constant 0 : i32
    %c0_i32_1 = arith.constant 0 : i32
    return %c0_i32, %c0_i32_0 : i32, i32
  }
  func.func @transform_6(%arg0: i32, %arg1: i32) -> (i32, i32) {
    %c0_i32 = arith.constant 0 : i32
    %c0_i32_0 = arith.constant 0 : i32
    %c0_i32_1 = arith.constant 0 : i32
    return %c0_i32, %c0_i32_0 : i32, i32
  }
  func.func @transform_7(%arg0: i32, %arg1: i32) -> (i32, i32) {
    %c0_i32 = arith.constant 0 : i32
    %c0_i32_0 = arith.constant 0 : i32
    %c0_i32_1 = arith.constant 0 : i32
    return %c0_i32, %c0_i32_0 : i32, i32
  }
  func.func @transform_8(%arg0: i32, %arg1: i32) -> (i32, i32) {
    %c0_i32 = arith.constant 0 : i32
    %c0_i32_0 = arith.constant 0 : i32
    %c0_i32_1 = arith.constant 0 : i32
    return %c0_i32, %c0_i32_0 : i32, i32
  }
  func.func @transform_9(%arg0: i32, %arg1: i32) -> (i32, i32) {
    %c0_i32 = arith.constant 0 : i32
    %c0_i32_0 = arith.constant 0 : i32
    %c0_i32_1 = arith.constant 0 : i32
    return %c0_i32, %c0_i32_0 : i32, i32
  }
  func.func @transform_10(%arg0: i32, %arg1: i32) -> (i32, i32) {
    %c0_i32 = arith.constant 0 : i32
    %c0_i32_0 = arith.constant 0 : i32
    %c0_i32_1 = arith.constant 0 : i32
    return %c0_i32, %c0_i32_0 : i32, i32
  }
  func.func @transform_11(%arg0: i32, %arg1: i32) -> (i32, i32) {
    %c0_i32 = arith.constant 0 : i32
    %c0_i32_0 = arith.constant 0 : i32
    %c0_i32_1 = arith.constant 0 : i32
    return %c0_i32, %c0_i32_0 : i32, i32
  }
  func.func @transform_12(%arg0: i32, %arg1: i32) -> (i32, i32) {
    %c0_i32 = arith.constant 0 : i32
    %c0_i32_0 = arith.constant 0 : i32
    %c0_i32_1 = arith.constant 0 : i32
    return %c0_i32, %c0_i32_0 : i32, i32
  }
  func.func @transform_13(%arg0: i32, %arg1: i32) -> (i32, i32) {
    %c0_i32 = arith.constant 0 : i32
    %c0_i32_0 = arith.constant 0 : i32
    %c0_i32_1 = arith.constant 0 : i32
    return %c0_i32, %c0_i32_0 : i32, i32
  }
  func.func @transform_14(%arg0: i32, %arg1: i32) -> (i32, i32) {
    %c0_i32 = arith.constant 0 : i32
    %c0_i32_0 = arith.constant 0 : i32
    %c0_i32_1 = arith.constant 0 : i32
    return %c0_i32, %c0_i32_0 : i32, i32
  }
  func.func @transform_15(%arg0: i32, %arg1: i32) -> (i32, i32) {
    %c0_i32 = arith.constant 0 : i32
    %c0_i32_0 = arith.constant 0 : i32
    %c0_i32_1 = arith.constant 0 : i32
    return %c0_i32, %c0_i32_0 : i32, i32
  }
  func.func @transform_16(%arg0: i32, %arg1: i32) -> (i32, i32) {
    %c0_i32 = arith.constant 0 : i32
    %c0_i32_0 = arith.constant 0 : i32
    %c0_i32_1 = arith.constant 0 : i32
    return %c0_i32, %c0_i32_0 : i32, i32
  }
  func.func @transform_17(%arg0: i32, %arg1: i32) -> (i32, i32) {
    %c0_i32 = arith.constant 0 : i32
    %c0_i32_0 = arith.constant 0 : i32
    %c0_i32_1 = arith.constant 0 : i32
    return %c0_i32, %c0_i32_0 : i32, i32
  }
  func.func @transform_18(%arg0: i32, %arg1: i32) -> (i32, i32) {
    %c0_i32 = arith.constant 0 : i32
    %c0_i32_0 = arith.constant 0 : i32
    %c0_i32_1 = arith.constant 0 : i32
    return %c0_i32, %c0_i32_0 : i32, i32
  }
  func.func @transform_19(%arg0: i32, %arg1: i32) -> (i32, i32, i32) {
    %c0_i32 = arith.constant 0 : i32
    %c0_i32_0 = arith.constant 0 : i32
    return %arg0, %arg1, %c0_i32 : i32, i32, i32
  }
  func.func @transform_20(%arg0: i32, %arg1: i32) -> (i32, i32, i32) {
    %c0_i32 = arith.constant 0 : i32
    %c0_i32_0 = arith.constant 0 : i32
    return %arg0, %arg1, %c0_i32 : i32, i32, i32
  }
}

</mosaic_0001>

<bundles_post_ra>
// kernel: tpu_custom_call.1
= control target key start
LH: loop header
LB: loop body
LE: loop exit
PB: predicated region body
PF: predicated region fallthrough
CT: control target
= control target key end

     0   :  { %s3270_s0 = inlined_call_operand.hbm [shape: f32[2,8,64], index: 0, kind: input, shape index: {}]   ;;  %s3271_s1 = inlined_call_operand.hbm [shape: f32[2,8,32], index: 1, kind: input, shape index: {}]   ;;  %s3272_s2 = inlined_call_operand.hbm [shape: f32[2,1,1,8], index: 2, kind: input, shape index: {}]   ;;  %s3273_s3 = inlined_call_operand.hbm [shape: bf16[64,64], index: 3, kind: input, shape index: {}]   ;;  %s3274_s4 = inlined_call_operand.vmem [shape: f32[1,64], index: 4, kind: input, shape index: {}]   ;;  %s3275_s5 = inlined_call_operand.hbm [shape: bf16[64,128], index: 5, kind: input, shape index: {}]   ;;  %s3276_s6 = inlined_call_operand.vmem [shape: f32[1,128], index: 6, kind: input, shape index: {}]   ;;  %s3277_s7 = inlined_call_operand.hbm [shape: bf16[32,32], index: 7, kind: input, shape index: {}]   ;;  %s3278_s8 = inlined_call_operand.vmem [shape: f32[1,32], index: 8, kind: input, shape index: {}]   ;;  %s3279_s9 = inlined_call_operand.hbm [shape: bf16[32,64], index: 9, kind: input, shape index: {}]   ;;  %s3280_s10 = inlined_call_operand.vmem [shape: f32[1,64], index: 10, kind: input, shape index: {}]   ;;  %s3281_s11 = inlined_call_operand.hbm [shape: bf16[64,64], index: 11, kind: input, shape index: {}]   ;;  %s3282_s12 = inlined_call_operand.vmem [shape: f32[1,64], index: 12, kind: input, shape index: {}]   ;;  %s3283_s13 = inlined_call_operand.vmem [shape: f32[1,64], index: 13, kind: input, shape index: {}]   ;;  %s3284_s14 = inlined_call_operand.vmem [shape: f32[1,64], index: 14, kind: input, shape index: {}]   ;;  %s3285_s15 = inlined_call_operand.hbm [shape: bf16[32,32], index: 15, kind: input, shape index: {}]   ;;  %s3286_s16 = inlined_call_operand.vmem [shape: f32[1,32], index: 16, kind: input, shape index: {}]   ;;  %s3287_s17 = inlined_call_operand.vmem [shape: f32[1,32], index: 17, kind: input, shape index: {}]   ;;  %s3288_s18 = inlined_call_operand.vmem [shape: f32[1,32], index: 18, kind: input, shape index: {}]   ;;  %s3289_s19 = inlined_call_operand.hbm [shape: f32[2,8,64], index: 19, kind: output, shape index: {0}]   ;;  %s3290_s20 = inlined_call_operand.hbm [shape: f32[2,8,32], index: 20, kind: output, shape index: {1}]  }
   0x1   :  { %3305 = sst [smem:[#allocation43_spill]] %s3270_s0 }
   0x2   :  { %3306 = sst [smem:[#allocation44_spill]] %s3271_s1 }
   0x3   :  { %3307 = sst [smem:[#allocation45_spill]] %s3272_s2 }
   0x4   :  { %3308 = sst [smem:[#allocation46_spill]] %s3273_s3 }
   0x5   :  { %3309 = sst [smem:[#allocation47_spill]] %s3274_s4 }
   0x6   :  { %3310 = sst [smem:[#allocation48_spill]] %s3275_s5 }
   0x7   :  { %3311 = sst [smem:[#allocation49_spill]] %s3277_s7 }
   0x8   :  { %3312 = sst [smem:[#allocation50_spill]] %s3279_s9 }
   0x9   :  { %3313 = sst [smem:[#allocation51_spill]] %s3281_s11 }
   0xa   :  { %3314 = sst [smem:[#allocation52_spill]] %s3283_s13 }
   0xb   :  { %3315 = sst [smem:[#allocation53_spill]] %s3284_s14 }
   0xc   :  { %3316 = sst [smem:[#allocation54_spill]] %s3285_s15 }
   0xd   :  { %3317 = sst [smem:[#allocation55_spill]] %s3287_s17 }
   0xe   :  { %3318 = sst [smem:[#allocation56_spill]] %s3288_s18 }
   0xf   :  { %3319 = sst [smem:[#allocation57_spill]] %s3289_s19 }
  0x10   :  { %3320 = sst [smem:[#allocation58_spill]] %s3290_s20 }
  0x11   :  { %26 = vsyncpa [#allocation11], 0 }
  0x12   :  { %28 = vsyncpa [#allocation11 + $0x1], 0 }
  0x13   :  { %29 = vsyncpa [#allocation14], 0 }
  0x14   :  { %31 = vsyncpa [#allocation14 + $0x1], 0 }
  0x15   :  { %32 = vsyncpa [#allocation17], 0 }
  0x16   :  { %33 = vsyncpa [#allocation20], 0 }
  0x17   :  { %34 = vsyncpa [#allocation23], 0 }
  0x18   :  { %35 = vsyncpa [#allocation12], 0 }
  0x19   :  { %37 = vsyncpa [#allocation12 + $0x1], 0 }
  0x1a   :  { %38 = vsyncpa [#allocation27], 0 }
  0x1b   :  { %40 = vsyncpa [#allocation27 + $0x1], 0  ;;  %s2868_s1 = smov 0   ;;  %s2870_s22 = smov 0  }
  0x1c   :  { %s2872_s23 = smov 0   ;;  %s2874_s24 = smov 0  }
  0x1d   :  { %s2876_s2 = smov 0   ;;  %s2878_s25 = smov 0  }
  0x1e LB: > { %3321 = sst [smem:[#allocation35_spill]] %s2720_s1  ;;  %s2899_s3 = sadd.s32 4294967295, %s2740_s25   ;;  %s2740_s25 = sphi %s2878_s25, %s46_s25   ;;  %s2736_s2 = sphi %s2876_s2, %s3367_s2   ;;  %s2732_s24 = sphi %s2874_s24, %s3366_s24   ;;  %s2728_s23 = sphi %s2872_s23, %s3362_s23   ;;  %s2724_s22 = sphi %s2870_s22, %s3365_s22   ;;  %s2720_s1 = sphi %s2868_s1, %s3364_s1  }
  0x1f   : > { %3322 = sst [smem:[#allocation36_spill]] %s2728_s23  ;;  %p2011_p0 = scmp.ge.s32.totalorder %s2740_s25, 1 }
  0x20   : > { %3323 = sst [smem:[#allocation37_spill]] %s2732_s24  ;;  %p79_p1 = scmp.eq.s32.totalorder %s2899_s3, 0 }
  0x21   : > { %3324 = sst [smem:[#allocation38_spill]] %s2740_s25  ;;  %p533_p2 = scmp.lt.s32.totalorder %s2740_s25, 3 }
  0x22   : > { %s3325_s28 = sld [smem:[#allocation46_spill]]  ;;  %s2742_s30 = smov [#allocation16]  }
  0x23   : > { %p2907_p3 = pnand %p2011_p0, %p533_p2  ;;  %s546_s0 = sshll.u32 %s2742_s30, 4  ;;  %s547_s0 = int_to_ptr.vmem [resolvable:$true] %s546_s0 }
  0x24   : > { %s3328_s7 = sld [smem:[#allocation49_spill]]  ;;  %s3291_s14 = smov 64  }
  0x25   : > { %p2186_p4 = pneg %p2907_p3  ;;  %s3293_s30 = smov 4  }
  0x26   : > { %s2745_s13 = smov [#allocation19]   ;;  %s3329_s11 = sld [smem:[#allocation51_spill]] }
  0x27   : > { %p2915_p5 = pnand %p2186_p4, %p79_p1  ;;  %s580_s18 = sshll.u32 %s2745_s13, 4  ;;  %s581_s18 = int_to_ptr.vmem [resolvable:$true] %s580_s18 }
  0x28   : > { %s544_s4 = sshll.u32 %s3325_s28, 4  ;;  %s2010_s13 = sadd.s32 4294967294, %s2740_s25   ;;  %s545_s4 = int_to_ptr.hbm [resolvable:$true] %s544_s4 }
  0x29   : > { %2189 = dma.hbm_to_vmem [thread:$0]  (!%p2915_p5), %s545_s4, 512, %s547_s0, [#allocation17], %s3291_s14, %s3291_s14, %s3293_s30  }
  0x2a   : > { %s578_s28 = sshll.u32 %s3328_s7, 4  ;;  %s2746_s4 = smov [#allocation22]   ;;  %s579_s28 = int_to_ptr.hbm [resolvable:$true] %s578_s28 }
  0x2b   : > { %2195 = dma.hbm_to_vmem [thread:$0]  (!%p2915_p5), %s579_s28, 256, %s581_s18, [#allocation20], %s3291_s14, %s3291_s14, %s3293_s30  }
  0x2c   : > { %s612_s7 = sshll.u32 %s3329_s11, 4  ;;  %s614_s0 = sshll.u32 %s2746_s4, 4  ;;  %s613_s7 = int_to_ptr.hbm [resolvable:$true] %s612_s7  ;;  %s615_s0 = int_to_ptr.vmem [resolvable:$true] %s614_s0 }
  0x2d   : > { %2201 = dma.hbm_to_vmem [thread:$0]  (!%p2915_p5), %s613_s7, 512, %s615_s0, [#allocation23], %s3291_s14, %s3291_s14, %s3293_s30  }
  0x2e   : > { %s58_s26 = sadd.s32 1, %s2736_s2  ;;  %s65_s27 = sadd.s32 1, %s2728_s23 }
  0x2f   : > { %p60_p7 = scmp.ge.s32.totalorder %s58_s26, 2  ;;  %p72_p8 = scmp.ne.s32.totalorder %s2728_s23, %s2724_s22 }
  0x30   : > { %p73_p9 = scmp.eq.s32.totalorder %s2740_s25, 0  ;;  %p78_p10 = scmp.ne.s32.totalorder %s2724_s22, %s2720_s1 }
  0x31   : > { %s3369_s26 = smov (%p60_p7, %s58_s26), 0  ;;  %p492_p13 = scmp.eq.s32.totalorder %s2899_s3, 1 }
  0x32   : > { %3330 = sst [smem:[#allocation39_spill]] %s3369_s26  ;;  %p2951_p11 = por %p73_p9, %p72_p8 }
  0x33   : > { %p2957_p12 = por %p79_p1, %p78_p10  ;;  %s62_s28 = ssub.s32 %s2736_s2, %s3369_s26 }
  0x34   : > { %p63_p0 = scmp.eq.s32.totalorder %s62_s28, 0  ;;  %p498_p2 = scmp.eq.s32.totalorder %s2010_s13, 1 }
  0x35   : > { %p2964_p4 = por %p492_p13, %p72_p8  ;;  %p2228_p7 = scmp.lt.s32.totalorder %s2740_s25, 2 }
  0x36   : > { %s2970_s0 = scalar_select %p63_p0, %s2728_s23, %s65_s27  }
  0x37   : > { %s3333_s4 = scalar_select %p2964_p4, 1, 0 }
  0x38   : > { %3335 = sst [smem:[#allocation41_spill]] %s2970_s0  ;;  %p2972_p9 = por %p498_p2, %p78_p10 }
  0x39   : > { %3334 = sst [smem:[#allocation40_spill]] %s3333_s4  ;;  %s2977_s30 = sand.u32 1, %s2728_s23  }
  0x3a   : > { %s3336_s14 = scalar_select %p2972_p9, 1, 0 }
  0x3b   : > { %s2019_s11 = sshll.u32 %s2977_s30, 3  ;;  %s2020_s26 = sshll.u32 %s2736_s2, 3 }
  0x3c   : > { %3337 = sst [smem:[#allocation42_spill]] %s3336_s14  ;;  %p2983_p6 = pnand %p2228_p7, %p2951_p11 }
  0x3d   : > { %s679_s28 = sand.u32 1, %s2740_s25   ;;  %s3339_s1 = sld [smem:[#allocation44_spill]] }
  0x3e   : > { %s683_s23 = scalar_lea.vmem [#allocation13], %s2019_s11  ;;  %s2993_s20 = scalar_lea.sflag [#allocation14], %s679_s28 }
  0x3f   : > { %s691_s14 = sshll.u32 %s683_s23, 4  ;;  %s3340_s5 = sld [smem:[#allocation48_spill]]  ;;  %s692_s14 = int_to_ptr.vmem [resolvable:$true] %s691_s14 }
  0x40   : > { %s2747_s24 = smov [#allocation18]   ;;  %s3341_s9 = sld [smem:[#allocation50_spill]] }
  0x41   : > { %s3342_s28 = smov 4   ;;  %s3343_s27 = smov 64  }
  0x42   : > { %s3344_s15 = sld [smem:[#allocation54_spill]] }
  0x43   : > { %s687_s4 = scalar_lea.hbm %s3339_s1, %s2020_s26  ;;  %s563_s1 = sshll.u32 %s2747_s24, 4  ;;  %s564_s1 = int_to_ptr.vmem [resolvable:$true] %s563_s1 }
  0x44   : > { %s689_s19 = sshll.u32 %s687_s4, 4  ;;  %s2749_s4 = smov [#allocation24]   ;;  %s690_s19 = int_to_ptr.hbm [resolvable:$true] %s689_s19 }
  0x45   : > { %2211 = dma.hbm_to_vmem [thread:$0]  (!%p2983_p6), %s690_s19, 128, %s692_s14, %s2993_s20  }
  0x46   : > { %s561_s25 = sshll.u32 %s3340_s5, 4  ;;  %s595_s23 = sshll.u32 %s3341_s9, 4  ;;  %s562_s25 = int_to_ptr.hbm [resolvable:$true] %s561_s25  ;;  %s596_s23 = int_to_ptr.hbm [resolvable:$true] %s595_s23 }
  0x47   : > { %2192 = dma.hbm_to_vmem [thread:$0]  (!%p2915_p5), %s562_s25, 512, %s564_s1, [#allocation17], %s3343_s27, %s3343_s27, %s3342_s28  }
  0x48   : > { %s2748_s14 = smov [#allocation21]   ;;  %s635_s24 = sshll.u32 %s3344_s15, 4  ;;  %s636_s24 = int_to_ptr.hbm [resolvable:$true] %s635_s24 }
  0x49   : > { %s597_s17 = sshll.u32 %s2748_s14, 4  ;;  %s637_s25 = sshll.u32 %s2749_s4, 4  ;;  %s598_s17 = int_to_ptr.vmem [resolvable:$true] %s597_s17  ;;  %s638_s25 = int_to_ptr.vmem [resolvable:$true] %s637_s25 }
  0x4a   : > { %2198 = dma.hbm_to_vmem [thread:$0]  (!%p2915_p5), %s596_s23, 256, %s598_s17, [#allocation20], %s3343_s27, %s3343_s27, %s3342_s28  }
  0x4b   : > { %s3345_s14 = sld [smem:[#allocation43_spill]]  ;;  %s664_s5 = scalar_lea.vmem [#allocation10], %s2019_s11 }
  0x4c   : > { %2204 = dma.hbm_to_vmem [thread:$0]  (!%p2915_p5), %s636_s24, 256, %s638_s25, [#allocation23], %s3343_s27, %s3343_s27, %s3342_s28  }
  0x4d   : > { %s672_s9 = sshll.u32 %s664_s5, 4  ;;  %s661_s23 = scalar_lea.sflag [#allocation11], %s2977_s30  ;;  %s673_s9 = int_to_ptr.vmem [resolvable:$true] %s672_s9 }
  0x4e   : > { %s3346_s1 = sld [smem:[#allocation45_spill]]  ;;  %s3041_s5 = sand.u32 (!%p2907_p3), 1, %s2724_s22  }
  0x4f   : > { %s720_s11 = scalar_lea.sflag (!%p2907_p3), [#allocation11], %s3041_s5 }
  0x51   : > { %s668_s19 = scalar_lea.hbm %s3345_s14, %s2020_s26  ;;  %s701_s26 = scalar_lea.vmem [#allocation15], %s2977_s30 }
  0x52   : > { %s670_s18 = sshll.u32 %s668_s19, 4  ;;  %s708_s21 = sshll.u32 %s701_s26, 4  ;;  %s671_s18 = int_to_ptr.hbm [resolvable:$true] %s670_s18  ;;  %s709_s21 = int_to_ptr.vmem [resolvable:$true] %s708_s21 }
  0x53   : > { %2208 = dma.hbm_to_vmem [thread:$0]  (!%p2983_p6), %s671_s18, 128, %s673_s9, %s661_s23  }
  0x54   : > { %s704_s0 = scalar_lea.hbm %s3346_s1, %s2736_s2  ;;  %717 = sbr.rel (%p2907_p3) target bundleno = 1516 (0x5ec), region = 96 }
  0x55   : > { %s706_s15 = sshll.u32 %s704_s0, 4  ;;  %s3044_s9 = sshll.u32 (!%p2907_p3), %s3041_s5, 3  ;;  %s707_s15 = int_to_ptr.hbm [resolvable:$true] %s706_s15 }
  0x56   : > { %2214 = dma.hbm_to_vmem [thread:$0]  (!%p2983_p6), %s707_s15, 16, %s709_s21, %s2993_s20  }
  0x57   : > { %s723_s28 = scalar_lea.vmem (!%p2907_p3), [#allocation10], %s3044_s9 }
  0x59   : > { %2691 = dma.done.wait (%p2957_p12), %s720_s11, 128  }
  0x5a   : > { %2693 = vsyncadd (%p2957_p12), %s720_s11, 4294967168  ;;  %s729_s15 = sand.u32 1, %s2899_s3   ;;  %s733_s29 = scalar_lea.vmem [#allocation13], %s3044_s9 }
  0x5b   : > { %s730_s20 = scalar_lea.sflag [#allocation14], %s729_s15 }
  0x5c   : > { %2695 = dma.done.wait (%p2957_p12), %s730_s20, 144  }
  0x5d   : > { %2697 = vsyncadd (%p2957_p12), %s730_s20, 4294967152  ;;  %s742_s30 = scalar_lea.vmem [#allocation15], %s3041_s5 }
  0x5e   : > { %2699 = dma.done.wait (%p79_p1), [#allocation17], 1024  }
  0x5f   : > { %2701 = vsyncadd (%p79_p1), [#allocation17], 4294966272 }
  0x60   : > { %2703 = dma.done.wait (%p79_p1), [#allocation20], 512  }
  0x61   : > { %2705 = vsyncadd (%p79_p1), [#allocation20], 4294966784 }
  0x62   : > { %2707 = dma.done.wait (%p79_p1), [#allocation23], 768  }
  0x63   : > { %2709 = vsyncadd (%p79_p1), [#allocation23], 4294966528  ;;  %v2137_v0 = vld [vmem:[#allocation18 + $0x18] sm:$0xff]  ;;  %v2145_v3 = vld [vmem:[#allocation19 + $0x8] sm:$0xff]  ;;  %vm934_vm0 = vcmask 261120   ;;  %vm887_vm1 = vcmask 523264  }
  0x64   : > { %v2139_v1 = vld [vmem:[#allocation21 + $0x8] sm:$0xff]  ;;  %895 = vmatpush.bf16.msra.mxu0 %v2137_v0  ;;  %v2136_v4 = vld [vmem:[#allocation18 + $0x10] sm:$0xff]  ;;  %1052 = vmatpush.bf16.msra.mxu3 %v2145_v3  ;;  %v2144_v8 = vld [vmem:[#allocation19] sm:$0xff]  ;;  %vm952_vm2 = vcmask 257024   ;;  %vm905_vm3 = vcmask 519168   ;;  %vm1091_vm4 = vcmask 64512  }
  0x65   : > { %v2143_v2 = vld [vmem:[#allocation16 + $0x18] sm:$0xff]  ;;  %944 = vmatpush.bf16.msra.mxu1 %v2139_v1  ;;  %v2138_v5 = vld [vmem:[#allocation21] sm:$0xff]  ;;  %v2135_v9 = vld [vmem:[#allocation18 + $0x8] sm:$0xff]  ;;  %s3347_s18 = sld [smem:[#allocation47_spill]]  ;;  %s2750_s23 = smov 112   ;;  %vm1070_vm5 = vcmask 130048  }
  0x66   : > { %v3071_v6 = vld [vmem:[%s733_s29] sm:$0xff]  ;;  %1009 = vmatpush.bf16.msra.mxu2 %v2143_v2  ;;  %v2134_v12 = vld [vmem:[#allocation18] sm:$0xff]  ;;  %v2305_v16 = vld [vmem:[%s3280_s10] ss:$0 sm:$0xff]  ;;  %s2751_s17 = smov 120   ;;  %s2752_s4 = smov 96  }
  0x67   : > { %v2142_v7 = vld [vmem:[#allocation16 + $0x10] sm:$0xff]  ;;  %v913_v10 = vpack.c.bf16 %v3071_v6, %v3071_v6  ;;  %v2141_v11 = vld [vmem:[#allocation16 + $0x8] sm:$0xff]  ;;  %v2140_v14 = vld [vmem:[#allocation16] sm:$0xff]  ;;  %s2753_s1 = smov 104   ;;  %s2754_s0 = smov 80   ;;  %vm1130_vm6 = vcmask 1043456  }
  0x68   : > { %896 = vmatpush.bf16.msra.mxu0 %v2136_v4  ;;  %1053 = vmatpush.bf16.msra.mxu3 %v2144_v8  ;;  %v3079_v13 = vld [vmem:[%s723_s28] sm:$0xff]  ;;  %s2755_s26 = smov 64   ;;  %vm1148_vm7 = vcmask 125952   ;;  %vm1168_vm8 = vcmask 60416   ;;  %s2756_s21 = smov 8   ;;  %vm1307_vm9 = vcmask 126016  }
  0x69   : > { %945 = vmatpush.bf16.msra.mxu1 %v2138_v5  ;;  %v850_v15 = vpack.c.bf16 %v3079_v13, %v3079_v13  ;;  %v2306_v20 = vld [vmem:[%s3278_s8] ss:$0 sm:$0xff]  ;;  %s2757_s11 = smov 32   ;;  %s2758_s28 = smov 16   ;;  %vm1446_vm10 = vcmask 191616   ;;  %vm1585_vm11 = vcmask 257216  }
  0x6a   : > { %1010 = vmatpush.bf16.msra.mxu2 %v2142_v7  ;;  %v2307_v21 = vld [vmem:[%s3276_s6] ss:$0 sm:$0xff]  ;;  %s2759_s15 = smov 24   ;;  %s2760_s20 = smov 48   ;;  %vm1278_vm12 = vcmask 257152   ;;  %vm1417_vm13 = vcmask 388352  }
  0x6b   : > { %2085 = vmatmul.msk.bf16.vlgmr.msra.gmra.mxu3 %vm934_vm0, %v913_v10  ;;  %v2308_v29 = vld [vmem:[%s3347_s18] ss:$0 sm:$0xff]  ;;  %vm1556_vm14 = vcmask 519552   ;;  %s3348_s13 = sld [smem:[#allocation37_spill]]  ;;  %s843_s3 = scalar_lea.vmem [#allocation26], %s3044_s9 }
  0x6c   : > { %2059 = vmatmul.msk.bf16.vlgmr.msra.gmra.mxu1 %vm934_vm0, %v913_v10  ;;  %897 = vmatpush.bf16.msra.mxu0 %v2135_v9  ;;  %s3349_s14 = sld [smem:[#allocation55_spill]]  ;;  %s3207_s7 = sshll.u32 %s843_s3, 4  ;;  %s1794_s7 = int_to_ptr.vmem [resolvable:$true] %s3207_s7 }
  0x6d   : > { %s836_s24 = scalar_lea.vmem [#allocation25], %s3044_s9  ;;  %s3355_s19 = sld [smem:[#allocation53_spill]] }
  0x6e   : > { %1011 = vmatpush.bf16.msra.mxu2 %v2141_v11  ;;  %s3210_s25 = sshll.u32 %s836_s24, 4  ;;  %s1765_s9 = scalar_lea.sflag [#allocation27], %s3041_s5  ;;  %s1779_s25 = int_to_ptr.vmem [resolvable:$true] %s3210_s25 }
  0x70   : > { %898 = vmatpush.bf16.msra.mxu0 %v2134_v12 }
  0x71   : > { %s2130_s27 = sshll.u32 %s3348_s13, 3 }
  0x72   : > { %1012 = vmatpush.bf16.msra.mxu2 %v2140_v14 }
  0x73   : > { %2050 = vmatmul.msk.bf16.vlgmr.msra.gmra.mxu0 %vm887_vm1, %v850_v15 }
  0x75   : > { %2076 = vmatmul.msk.bf16.vlgmr.msra.gmra.mxu2 %vm887_vm1, %v850_v15 }
  0xe9   : > { %v947_v17 = vpop.f32.mrf.mxu1 }
  0xea   : > { %v948_v18 = vadd.f32 %v2305_v16, %v947_v17 }
  0xec   : > { %v3088_v19 = vpack.c.bf16 %v948_v18, %v948_v18 }
  0xee   : > { %953 = vst.msk [vmem:[#allocation4] sm:$0xf] %vm952_vm2, %v3088_v19  ;;  %v1055_v22 = vpop.f32.mrf.mxu3 }
  0xef   : > { %v1056_v23 = vadd.f32 %v2306_v20, %v1055_v22 }
  0xf0   : > { %v900_v24 = vpop.f32.mrf.mxu0 }
  0xf1   : > { %v949_v25 = vpop.f32.mrf.mxu1  ;;  %v901_v26 = vadd.f32 %v2307_v21, %v900_v24  ;;  %v1059_v27 = vpack.c.bf16 %v1056_v23, %v1056_v23 }
  0xf3   : > { %v3098_v28 = vpack.c.bf16 %v901_v26, %v901_v26  ;;  %1061 = vst.msk [vmem:[#allocation7] sm:$0xf] %vm952_vm2, %v1059_v27 }
  0xf5   : > { %v1069_v30 = vld [vmem:[#allocation4] sm:$0xf]  ;;  %906 = vst.msk [vmem:[#allocation2] sm:$0xf] %vm905_vm3, %v3098_v28 }
  0xf6   : > { %v1312_v31 = vld [vmem:[#allocation4] sm:$0xf]  ;;  %v1096_v32 = vsel %vm1091_vm4, %v1069_v30, 0  ;;  %v1057_v37 = vpop.f32.mrf.mxu3 }
  0xf7   : > { %v1349_v33 = vunpack.c.l.b16 %v1312_v31  ;;  %v1173_v34 = vld [vmem:[#allocation4] sm:$0xf]  ;;  %1105 = vmatpush.bf16.xpose.msrb.mxu3 %v1096_v32 }
  0xf8   : > { %v1210_v35 = vunpack.c.l.b16 %v1173_v34  ;;  %v1014_v36 = vpop.f32.mrf.mxu2  ;;  %v902_v40 = vpop.f32.mrf.mxu0  ;;  %v1451_v56 = vld [vmem:[#allocation4] sm:$0xf] }
  0xf9   : > { %v1350_v38 = vpack.c.b16 %v1349_v33, %v1349_v33  ;;  %v1015_v39 = vadd.f32 %v2308_v29, %v1014_v36  ;;  %v1488_v60 = vunpack.c.l.b16 %v1451_v56 }
  0xfa   : > { %v1211_v41 = vpack.c.b16 %v1210_v35, %v1210_v35  ;;  %v1068_v43 = vld [vmem:[#allocation7] sm:$0xf] }
  0xfb   : > { %1351 = vrot.lane.b32.xlu2 %v1350_v38, %s2750_s23  ;;  %v1018_v42 = vpack.c.bf16 %v1015_v39, %v1015_v39  ;;  %v1172_v44 = vld [vmem:[#allocation7] sm:$0xf]  ;;  %v1489_v0 = vpack.c.b16 %v1488_v60, %v1488_v60  ;;  %v2309_v38 = vld [vmem:[%s742_s30] ss:$0 sm:$0xff]  ;;  %s3354_s30 = sld [smem:[#allocation52_spill]] }
  0xfc   : > { %1212 = vrot.lane.b32.xlu0 %v1211_v41, %s2751_s17  ;;  %v1067_v45 = vld [vmem:[#allocation2] sm:$0xf]  ;;  %v1205_v46 = vunpack.c.l.b16 %v1172_v44  ;;  %v1311_v57 = vld [vmem:[#allocation7] sm:$0xf] }
  0xfd   : > { %1020 = vst.msk [vmem:[#allocation6] sm:$0xf] %vm905_vm3, %v1018_v42  ;;  %v1310_v47 = vld [vmem:[#allocation2] sm:$0xf]  ;;  %v1075_v48 = vsel %vm1070_vm5, %v1067_v45, 0  ;;  %v1344_v62 = vunpack.c.l.b16 %v1311_v57 }
  0xfe   : > { %2087 = vmatmul.msk.bf16.vlgmr.msrb.gmra.mxu3 %vm1091_vm4, %v1068_v43  ;;  %v1319_v49 = vunpack.c.l.b16 %v1310_v47  ;;  %v1171_v50 = vld [vmem:[#allocation2] sm:$0xf]  ;;  %1084 = vmatpush.bf16.xpose.msrb.mxu1 %v1075_v48  ;;  %v1206_v51 = vpack.c.b16 %v1205_v46, %v1205_v46  ;;  %v1450_v11 = vld [vmem:[#allocation7] sm:$0xf] }
  0xff   : > { %v1180_v52 = vunpack.c.l.b16 %v1171_v50  ;;  %v1345_v2 = vpack.c.b16 %v1344_v62, %v1344_v62  ;;  %v1449_v4 = vld [vmem:[#allocation2] sm:$0xf]  ;;  %v1483_v14 = vunpack.c.l.b16 %v1450_v11 }
 0x100   : > { %v1016_v53 = vpop.f32.mrf.mxu2  ;;  %v1320_v54 = vpack.c.b16 %v1319_v49, %v1319_v49  ;;  %1207 = vrot.lane.b32.xlu1 %v1206_v51, %s2751_s17  ;;  %v1458_v8 = vunpack.c.l.b16 %v1449_v4 }
 0x101   : > { %v1181_v55 = vpack.c.b16 %v1180_v52, %v1180_v52  ;;  %v1484_v15 = vpack.c.b16 %v1483_v14, %v1483_v14 }
 0x102   : > { %v1459_v12 = vpack.c.b16 %v1458_v8, %v1458_v8 }
 0x103   : > { %1321 = vrot.lane.b32.xlu2 %v1320_v54, %s2752_s4 }
 0x104   : > { %1182 = vrot.lane.b32.xlu0 %v1181_v55, %s2750_s23  ;;  %v1066_v58 = vld [vmem:[#allocation6] sm:$0xf] }
 0x105   : > { %v1170_v59 = vld [vmem:[#allocation6] sm:$0xf]  ;;  %2086 = vmatmul.msk.bf16.vlgmr.msrb.gmra.mxu1 %vm1070_vm5, %v1066_v58 }
 0x106   : > { %v1175_v61 = vunpack.c.l.b16 %v1170_v59  ;;  %v1309_v1 = vld [vmem:[#allocation6] sm:$0xf] }
 0x107   : > { %v1448_v3 = vld [vmem:[#allocation6] sm:$0xf]  ;;  %v1314_v5 = vunpack.c.l.b16 %v1309_v1 }
 0x108   : > { %v1176_v63 = vpack.c.b16 %v1175_v61, %v1175_v61  ;;  %v1453_v7 = vunpack.c.l.b16 %v1448_v3 }
 0x109   : > { %v1315_v9 = vpack.c.b16 %v1314_v5, %v1314_v5 }
 0x10a   : > { %1177 = vrot.lane.b32.xlu1 %v1176_v63, %s2750_s23  ;;  %v1454_v10 = vpack.c.b16 %v1453_v7, %v1453_v7 }
 0x10b   : > { %1490 = vrot.lane.b32.xlu2 %v1489_v0, %s2753_s1 }
 0x10c   : > { %1346 = vrot.lane.b32.xlu0 %v1345_v2, %s2750_s23 }
 0x112   : > { %1316 = vrot.lane.b32.xlu1 %v1315_v9, %s2752_s4 }
 0x113   : > { %1455 = vrot.lane.b32.xlu2 %v1454_v10, %s2754_s0 }
 0x114   : > { %1460 = vrot.lane.b32.xlu0 %v1459_v12, %s2754_s0 }
 0x11a   : > { %1485 = vrot.lane.b32.xlu1 %v1484_v15, %s2753_s1 }
 0x11b   : > { %955 = vrot.lane.b32.xlu2 %v3088_v19, %s2752_s4 }
 0x155   : > { %v1352_v16 = vpop.permute.xlu2 %1351 }
 0x156   : > { %v1357_v23 = vsel %vm1091_vm4, %v1352_v16, 0 }
 0x15d   : > { %v1322_v17 = vpop.permute.xlu2 %1321 }
 0x15e   : > { %v1327_v29 = vsel %vm1070_vm5, %v1322_v17, 0 }
 0x165   : > { %v1491_v18 = vpop.permute.xlu2 %1490 }
 0x166   : > { %v1496_v27 = vsel %vm1091_vm4, %v1491_v18, 0 }
 0x16d   : > { %v1456_v20 = vpop.permute.xlu2 %1455 }
 0x16e   : > { %v1213_v21 = vpop.permute.xlu0 %1212 }
 0x16f   : > { %v1218_v22 = vsel %vm1091_vm4, %v1213_v21, 0 }
 0x170   : > { %1227 = vmatpush.bf16.xpose.msra.mxu3 %v1218_v22 }
 0x172   : > { %v1208_v24 = vpop.permute.xlu1 %1207 }
 0x175   : > { %v956_v25 = vpop.permute.xlu2 %955 }
 0x176   : > { %958 = vst.msk [vmem:[#allocation5] sm:$0xf] %vm952_vm2, %v956_v25  ;;  %v1183_v26 = vpop.permute.xlu0 %1182 }
 0x177   : > { %v1188_v19 = vsel %vm1070_vm5, %v1183_v26, 0  ;;  %2091 = vmatmul.msk.bf16.vlgmr.msra.gmra.mxu3 %vm1091_vm4, %v1208_v24 }
 0x178   : > { %1366 = vmatpush.bf16.xpose.msrb.mxu3 %v1357_v23  ;;  %1197 = vmatpush.bf16.xpose.msra.mxu1 %v1188_v19 }
 0x17c   : > { %v1178_v31 = vpop.permute.xlu1 %1177 }
 0x17d   : > { %v1150_v30 = vld [vmem:[#allocation5] sm:$0xf] }
 0x17e   : > { %v1347_v32 = vpop.permute.xlu0 %1346  ;;  %v1152_v33 = vsel %vm1130_vm6, %v1150_v30, 0  ;;  %v1280_v24 = vld [vmem:[#allocation5] sm:$0xf] }
 0x17f   : > { %2090 = vmatmul.msk.bf16.vlgmr.msra.gmra.mxu1 %vm1070_vm5, %v1178_v31  ;;  %1161 = vmatpush.bf16.msrb.mxu2 %v1152_v33  ;;  %v1282_v25 = vunpack.c.l.b16 %v1280_v24  ;;  %v1558_v30 = vld [vmem:[#allocation5] sm:$0xf] }
 0x180   : > { %1505 = vmatpush.bf16.xpose.msra.mxu3 %v1496_v27  ;;  %1336 = vmatpush.bf16.xpose.msrb.mxu1 %v1327_v29  ;;  %v1560_v31 = vunpack.c.l.b16 %v1558_v30 }
 0x181   : > { %v1107_v34 = vpop.f32.mrf.mxu3  ;;  %v1283_v26 = vpack.c.b16 %v1282_v25, %v1282_v25 }
 0x182   : > { %v1086_v35 = vpop.f32.mrf.mxu1  ;;  %v1111_v36 = vmul.f32 0.35355338, %v1107_v34 }
 0x183   : > { %v1090_v37 = vmul.f32 0.25, %v1086_v35 }
 0x184   : > { %v1317_v45 = vpop.permute.xlu1 %1316 }
 0x185   : > { %v1112_v40 = vadd.f32 %v1111_v36, %v1090_v37 }
 0x186   : > { %v1461_v39 = vpop.permute.xlu0 %1460 }
 0x187   : > { %v1466_v41 = vsel %vm1070_vm5, %v1461_v39, 0  ;;  %2095 = vmatmul.msk.bf16.vlgmr.msrb.gmra.mxu3 %vm1091_vm4, %v1347_v32  ;;  %v1113_v42 = vadd.f32 %v2309_v38, %v1112_v40  ;;  %v1561_v32 = vpack.c.b16 %v1560_v31, %v1560_v31 }
 0x188   : > { %1475 = vmatpush.bf16.xpose.msra.mxu1 %v1466_v41 }
 0x189   : > { %v1109_v43 = vpop.f32.mrf.mxu3  ;;  %v1114_v44 = vsel %vm1091_vm4, %v1113_v42, -inf }
 0x18a   : > { %1115 = vmax.xlane.f32.xlu0 %v1114_v44  ;;  %v1088_v46 = vpop.f32.mrf.mxu1 }
 0x18c   : > { %v1486_v47 = vpop.permute.xlu1 %1485 }
 0x18f   : > { %2094 = vmatmul.msk.bf16.vlgmr.msrb.gmra.mxu1 %vm1070_vm5, %v1317_v45 }
 0x197   : > { %2099 = vmatmul.msk.bf16.vlgmr.msra.gmra.mxu3 %vm1091_vm4, %v1486_v47 }
 0x19e   : > { %908 = vrot.lane.b32.xlu0 %v3098_v28, %s2755_s26  ;;  %s3352_s26 = sld [smem:[#allocation57_spill]] }
 0x19f   : > { %2098 = vmatmul.msk.bf16.vlgmr.msra.gmra.mxu1 %vm1070_vm5, %v1456_v20 }
 0x1fa   : > { %v1229_v48 = vpop.f32.mrf.mxu3 }
 0x1fb   : > { %v1233_v50 = vmul.f32 0.35355338, %v1229_v48 }
 0x1fc   : > { %v1199_v49 = vpop.f32.mrf.mxu1 }
 0x1fd   : > { %v1203_v51 = vmul.f32 0.25, %v1199_v49  ;;  %v1116_v57 = vpop.xlane.xlu0 %1115 }
 0x1fe   : > { %v1117_v58 = vsub.f32 %v1113_v42, %v1116_v57  ;;  %v1419_v42 = vld [vmem:[#allocation5] sm:$0xf] }
 0x1ff   : > { %v1234_v52 = vadd.f32 %v1233_v50, %v1203_v51  ;;  %v1421_v47 = vunpack.c.l.b16 %v1419_v42 }
 0x200   : > { %v1118_v63 = vmul.f32 1.442695, %v1117_v58 }
 0x201   : > { %v1235_v53 = vadd.f32 %v2309_v38, %v1234_v52  ;;  %v1422_v52 = vpack.c.b16 %v1421_v47, %v1421_v47  ;;  %v2150_v47 = vld [vmem:[#allocation24] sm:$0xff] }
 0x202   : > { %v1231_v54 = vpop.f32.mrf.mxu3  ;;  %2316 = vpow2.f32 %v1118_v63 }
 0x203   : > { %v1236_v55 = vsel %vm1091_vm4, %v1235_v53, -inf }
 0x204   : > { %1237 = vmax.xlane.f32.xlu1 %v1236_v55  ;;  %v1201_v56 = vpop.f32.mrf.mxu1 }
 0x208   : > { %v2317_v5 = vpop.eup %2316 }
 0x209   : > { %v1120_v10 = vsel %vm1091_vm4, %v2317_v5, 0.0 }
 0x20a   : > { %v1368_v59 = vpop.f32.mrf.mxu3 }
 0x20b   : > { %v1372_v61 = vmul.f32 0.35355338, %v1368_v59 }
 0x20c   : > { %v1338_v60 = vpop.f32.mrf.mxu1 }
 0x20d   : > { %v1342_v62 = vmul.f32 0.25, %v1338_v60 }
 0x20f   : > { %v1373_v0 = vadd.f32 %v1372_v61, %v1342_v62 }
 0x210   : > { %v909_v2 = vpop.permute.xlu0 %908 }
 0x211   : > { %v3144_v28 = vadd.f32 %v2309_v38, %v1373_v0  ;;  %911 = vst.msk [vmem:[#allocation3] sm:$0xf] %vm905_vm3, %v909_v2 }
 0x212   : > { %v1370_v1 = vpop.f32.mrf.mxu3 }
 0x213   : > { %v1375_v3 = vsel %vm1091_vm4, %v3144_v28, -inf }
 0x214   : > { %1376 = vmax.xlane.f32.xlu2 %v1375_v3  ;;  %v1340_v4 = vpop.f32.mrf.mxu1 }
 0x218   : > { %v1126_v8 = vld [vmem:[#allocation3] sm:$0xf] }
 0x219   : > { %v1248_v9 = vld [vmem:[#allocation3] sm:$0xf]  ;;  %v1132_v11 = vsel %vm1130_vm6, %v1126_v8, 0 }
 0x21a   : > { %v1507_v7 = vpop.f32.mrf.mxu3  ;;  %v1250_v12 = vunpack.c.l.b16 %v1248_v9  ;;  %1141 = vmatpush.bf16.msrb.mxu0 %v1132_v11  ;;  %v1387_v27 = vld [vmem:[#allocation3] sm:$0xf] }
 0x21b   : > { %v1511_v15 = vmul.f32 0.35355338, %v1507_v7  ;;  %v1389_v19 = vunpack.c.l.b16 %v1387_v27  ;;  %v1526_v61 = vld [vmem:[#allocation3] sm:$0xf] }
 0x21c   : > { %1121 = vadd.xlane.f32.xlu2 %v1120_v10  ;;  %v1477_v14 = vpop.f32.mrf.mxu1  ;;  %v1251_v17 = vpack.c.b16 %v1250_v12, %v1250_v12  ;;  %v1528_v62 = vunpack.c.l.b16 %v1526_v61 }
 0x21d   : > { %v1481_v16 = vmul.f32 0.25, %v1477_v14  ;;  %v1390_v29 = vpack.c.b16 %v1389_v19, %v1389_v19 }
 0x21e   : > { %1252 = vrot.lane.b32.xlu0 %v1251_v17, %s2750_s23  ;;  %v1529_v63 = vpack.c.b16 %v1528_v62, %v1528_v62 }
 0x21f   : > { %v1512_v18 = vadd.f32 %v1511_v15, %v1481_v16 }
 0x221   : > { %v1513_v20 = vadd.f32 %v2309_v38, %v1512_v18 }
 0x222   : > { %v1509_v21 = vpop.f32.mrf.mxu3 }
 0x223   : > { %v1514_v22 = vsel %vm1091_vm4, %v1513_v20, -inf }
 0x224   : > { %1515 = vmax.xlane.f32.xlu1 %v1514_v22  ;;  %v1479_v23 = vpop.f32.mrf.mxu1 }
 0x234   : > { %1284 = vrot.lane.b32.xlu2 %v1283_v26, %s2751_s17 }
 0x23c   : > { %1391 = vrot.lane.b32.xlu2 %v1390_v29, %s2752_s4 }
 0x244   : > { %1562 = vrot.lane.b32.xlu2 %v1561_v32, %s2753_s1 }
 0x277   : > { %v1238_v33 = vpop.xlane.xlu1 %1237 }
 0x278   : > { %v1239_v34 = vsub.f32 %v1235_v53, %v1238_v33 }
 0x27a   : > { %v1240_v35 = vmul.f32 1.442695, %v1239_v34 }
 0x27c   : > { %2318 = vpow2.f32 %v1240_v35 }
 0x282   : > { %v2319_v36 = vpop.eup %2318 }
 0x283   : > { %v1242_v37 = vsel %vm1091_vm4, %v2319_v36, 0.0 }
 0x284   : > { %1243 = vadd.xlane.f32.xlu1 %v1242_v37 }
 0x287   : > { %v1377_v38 = vpop.xlane.xlu2 %1376 }
 0x288   : > { %v1378_v57 = vsub.f32 %v3144_v28, %v1377_v38 }
 0x28a   : > { %v1379_v58 = vmul.f32 1.442695, %v1378_v57 }
 0x28f   : > { %v1122_v39 = vpop.xlane.xlu2 %1121 }
 0x290   : > { %2320 = vrcp.f32 %v1122_v39  ;;  %v1253_v40 = vpop.permute.xlu0 %1252 }
 0x291   : > { %v1258_v41 = vsel %vm1130_vm6, %v1253_v40, 0 }
 0x292   : > { %1267 = vmatpush.bf16.msra.mxu0 %v1258_v41 }
 0x296   : > { %v2321_v43 = vpop.eup %2320 }
 0x297   : > { %v1124_v44 = vmul.f32 %v2321_v43, %v2317_v5  ;;  %v1285_v45 = vpop.permute.xlu2 %1284  ;;  %v1516_v46 = vpop.xlane.xlu1 %1515 }
 0x298   : > { %v1287_v48 = vsel %vm1130_vm6, %v1285_v45, 0  ;;  %v1517_v49 = vsub.f32 %v1513_v20, %v1516_v46  ;;  %v2151_v45 = vld [vmem:[#allocation24 + $0x8] sm:$0xff]  ;;  %v2149_v46 = vld [vmem:[#allocation22 + $0x18] sm:$0xff] }
 0x299   : > { %1296 = vmatpush.bf16.msra.mxu2 %v1287_v48  ;;  %v1125_v50 = vpack.c.bf16 %v1124_v44, %v1124_v44  ;;  %1711 = vmatpush.bf16.msrb.mxu3 %v2151_v45  ;;  %v2148_v48 = vld [vmem:[#allocation22 + $0x10] sm:$0xff] }
 0x29a   : > { %v1518_v51 = vmul.f32 1.442695, %v1517_v49  ;;  %1631 = vmatpush.bf16.msrb.mxu1 %v2149_v46  ;;  %v2147_v49 = vld [vmem:[#allocation22 + $0x8] sm:$0xff]  ;;  %v2312_v46 = vld [vmem:[%s3349_s14] ss:$0 sm:$0xff] }
 0x29b   : > { %2088 = vmatmul.msk.bf16.vlgmr.msrb.gmra.mxu0 %vm1091_vm4, %v1125_v50  ;;  %2089 = vmatmul.msk.bf16.vlgmr.msrb.gmra.mxu2 %vm1091_vm4, %v1125_v50  ;;  %v2146_v50 = vld [vmem:[#allocation22] sm:$0xff] }
 0x29c   : > { %2322 = vpow2.f32 %v1518_v51 }
 0x29d   : > { %1423 = vrot.lane.b32.xlu1 %v1422_v52, %s2750_s23  ;;  %2324 = vpow2.f32 %v1379_v58  ;;  %1712 = vmatpush.bf16.msrb.mxu3 %v2150_v47  ;;  %v2310_v58 = vld [vmem:[%s3286_s16] ss:$0 sm:$0xff]  ;;  %s3350_s23 = sld [smem:[#allocation58_spill]] }
 0x29e   : > { %1632 = vmatpush.bf16.msrb.mxu1 %v2148_v48 }
 0x29f   : > { %v1392_v53 = vpop.permute.xlu2 %1391 }
 0x2a0   : > { %v1397_v54 = vsel %vm1130_vm6, %v1392_v53, 0 }
 0x2a1   : > { %1406 = vmatpush.bf16.msrb.mxu0 %v1397_v54 }
 0x2a2   : > { %v2323_v55 = vpop.eup %2322  ;;  %1633 = vmatpush.bf16.msrb.mxu1 %v2147_v49 }
 0x2a3   : > { %v1520_v56 = vsel %vm1091_vm4, %v2323_v55, 0.0  ;;  %v2325_v59 = vpop.eup %2324  ;;  %s3351_s17 = smov %s3350_s23  ;;  %s1791_s4 = scalar_lea.hbm %s3350_s23, %s2130_s27 }
 0x2a4   : > { %1521 = vadd.xlane.f32.xlu0 %v1520_v56  ;;  %v1381_v60 = vsel %vm1091_vm4, %v2325_v59, 0.0  ;;  %s1795_s13 = sshll.u32 %s1791_s4, 4  ;;  %s1796_s13 = int_to_ptr.hbm [resolvable:$true] %s1795_s13 }
 0x2a5   : > { %s2624_s4 = sshra.s32 %s1796_s13, 4  ;;  %s2625_s4 = int_to_ptr.hbm [resolvable:$true] %s2624_s4 }
 0x2a6   : > { %1634 = vmatpush.bf16.msrb.mxu1 %v2146_v50  ;;  %s2626_s1 = scalar_lea.hbm %s2625_s4, 8  ;;  %p2631_p6 = scmp.lt.s32.totalorder %s2625_s4, %s3351_s17 }
 0x2a7   : > { %v1563_v28 = vpop.permute.xlu2 %1562  ;;  %p2627_p1 = scmp.ne.s32.totalorder %s2625_s4, %s2626_s1 }
 0x2a8   : > { %v1565_v7 = vsel %vm1130_vm6, %v1563_v28, 0 }
 0x2a9   : > { %p2628_p3 = pnand %p2627_p1, %p2964_p4 }
 0x2ab   : > { %p2629_p5 = pneg %p2628_p3 }
 0x2c7   : > { %1382 = vadd.xlane.f32.xlu1 %v1381_v60  ;;  %v2311_v60 = vld [vmem:[%s3282_s12] ss:$0 sm:$0xff] }
 0x2e0   : > { %1530 = vrot.lane.b32.xlu1 %v1529_v63, %s2754_s0 }
 0x2f7   : > { %v1244_v0 = vpop.xlane.xlu1 %1243 }
 0x2f8   : > { %2326 = vrcp.f32 %v1244_v0 }
 0x2fe   : > { %v2327_v1 = vpop.eup %2326 }
 0x2ff   : > { %v1246_v2 = vmul.f32 %v2327_v1, %v2319_v36 }
 0x301   : > { %v1247_v3 = vpack.c.bf16 %v1246_v2, %v1246_v2 }
 0x303   : > { %2092 = vmatmul.msk.bf16.vlgmr.msra.gmra.mxu0 %vm1091_vm4, %v1247_v3  ;;  %2093 = vmatmul.msk.bf16.vlgmr.msra.gmra.mxu2 %vm1091_vm4, %v1247_v3 }
 0x30f   : > { %v1424_v4 = vpop.permute.xlu1 %1423 }
 0x310   : > { %v1426_v5 = vsel %vm1130_vm6, %v1424_v4, 0 }
 0x311   : > { %1435 = vmatpush.bf16.msrb.mxu2 %v1426_v5  ;;  %v2761_v5 = vmov 32.0  }
 0x315   : > { %1574 = vmatpush.bf16.msra.mxu2 %v1565_v7  ;;  %v2762_v7 = vmov 64.0  }
 0x317   : > { %v1522_v18 = vpop.xlane.xlu0 %1521 }
 0x318   : > { %v1143_v8 = vpop.f32.mrf.mxu0 }
 0x319   : > { %v1147_v9 = vpack.c.bf16 %v1143_v8, %v1143_v8 }
 0x31b   : > { %1149 = vst.msk [vmem:[#allocation8] sm:$0xf] %vm1148_vm7, %v1147_v9 }
 0x31e   : > { %v1163_v10 = vpop.f32.mrf.mxu2 }
 0x31f   : > { %v1167_v11 = vpack.c.bf16 %v1163_v10, %v1163_v10 }
 0x320   : > { %v1145_v12 = vpop.f32.mrf.mxu0 }
 0x321   : > { %1169 = vst.msk [vmem:[#allocation9] sm:$0xf] %vm1168_vm8, %v1167_v11 }
 0x326   : > { %v1165_v14 = vpop.f32.mrf.mxu2 }
 0x33a   : > { %v1383_v15 = vpop.xlane.xlu1 %1382 }
 0x33b   : > { %2328 = vrcp.f32 %v1383_v15 }
 0x33c   : > { %2330 = vrcp.f32 %v1522_v18 }
 0x33d   : > { %2332 = vrcp.f32 %v2761_v5 }
 0x33e   : > { %2334 = vrcp.f32 %v2762_v7 }
 0x341   : > { %v2329_v16 = vpop.eup %2328 }
 0x342   : > { %v1385_v17 = vmul.f32 %v2329_v16, %v2325_v59  ;;  %v2331_v21 = vpop.eup %2330 }
 0x343   : > { %v1524_v22 = vmul.f32 %v2331_v21, %v2323_v55  ;;  %v2333_v8 = vpop.eup %2332 }
 0x344   : > { %v1386_v20 = vpack.c.bf16 %v1385_v17, %v1385_v17  ;;  %v2335_v9 = vpop.eup %2334  ;;  %v1723_v10 = vmul.f32 32.0, %v2333_v8  ;;  %vm1727_vm15 = vweird.f32 %v2333_v8 }
 0x345   : > { %v1525_v25 = vpack.c.bf16 %v1524_v22, %v1524_v22  ;;  %v1645_v11 = vmul.f32 64.0, %v2335_v9  ;;  %vm1649_vm2 = vweird.f32 %v2335_v9 }
 0x346   : > { %2096 = vmatmul.msk.bf16.vlgmr.msrb.gmra.mxu0 %vm1091_vm4, %v1386_v20  ;;  %2097 = vmatmul.msk.bf16.vlgmr.msrb.gmra.mxu2 %vm1091_vm4, %v1386_v20 }
 0x347   : > { %v1646_v12 = vsub.f32 1.0, %v1645_v11 }
 0x349   : > { %v1647_v15 = vmul.f32 %v2335_v9, %v1646_v12 }
 0x352   : > { %v1531_v23 = vpop.permute.xlu1 %1530 }
 0x353   : > { %v1536_v24 = vsel %vm1130_vm6, %v1531_v23, 0 }
 0x354   : > { %1545 = vmatpush.bf16.msra.mxu0 %v1536_v24 }
 0x356   : > { %2101 = vmatmul.msk.bf16.vlgmr.msra.gmra.mxu2 %vm1091_vm4, %v1525_v25 }
 0x357   : > { %2100 = vmatmul.msk.bf16.vlgmr.msra.gmra.mxu0 %vm1091_vm4, %v1525_v25 }
 0x380   : > { %v1269_v26 = vpop.f32.mrf.mxu0 }
 0x381   : > { %v1273_v37 = vpack.c.bf16 %v1269_v26, %v1269_v26 }
 0x386   : > { %v1298_v27 = vpop.f32.mrf.mxu2 }
 0x387   : > { %v1302_v19 = vpack.c.bf16 %v1298_v27, %v1298_v27 }
 0x388   : > { %v1271_v29 = vpop.f32.mrf.mxu0 }
 0x389   : > { %1304 = vrot.lane.b32.xlu2 %v1302_v19, %s2756_s21  ;;  %s1776_s21 = scalar_lea.hbm %s3352_s26, %s2130_s27 }
 0x38a   : > { %s1780_s23 = sshll.u32 %s1776_s21, 4  ;;  %s3217_s23 = int_to_ptr.hbm [resolvable:$true] %s1780_s23 }
 0x38e   : > { %v1300_v30 = vpop.f32.mrf.mxu2 }
 0x3c3   : > { %v1408_v31 = vpop.f32.mrf.mxu0 }
 0x3c4   : > { %v1412_v32 = vpack.c.bf16 %v1408_v31, %v1408_v31 }
 0x3c6   : > { %1414 = vrot.lane.b32.xlu0 %v1412_v32, %s2757_s11  ;;  %s2630_s11 = scalar_lea.hbm %s3351_s17, 16 }
 0x3c7   : > { %p2632_p8 = scmp.lt.s32.totalorder %s2630_s11, %s2626_s1 }
 0x3c9   : > { %v1437_v33 = vpop.f32.mrf.mxu2  ;;  %p2633_p10 = por %p2632_p8, %p2631_p6 }
 0x3ca   : > { %v1441_v34 = vpack.c.bf16 %v1437_v33, %v1437_v33 }
 0x3cb   : > { %v1410_v35 = vpop.f32.mrf.mxu0  ;;  %p2634_p11 = pnand %p2633_p10, %p2629_p5 }
 0x3cc   : > { %1443 = vrot.lane.b32.xlu1 %v1441_v34, %s2758_s28 }
 0x3d1   : > { %v1439_v36 = vpop.f32.mrf.mxu2 }
 0x3d4   : > { %1275 = vrot.lane.b32.xlu1 %v1273_v37, %s2758_s28  ;;  %v1547_v38 = vpop.f32.mrf.mxu0 }
 0x3d5   : > { %v1551_v43 = vpack.c.bf16 %v1547_v38, %v1547_v38 }
 0x3d9   : > { %v1576_v39 = vpop.f32.mrf.mxu2 }
 0x3da   : > { %v1580_v40 = vpack.c.bf16 %v1576_v39, %v1576_v39 }
 0x3dc   : > { %1582 = vrot.lane.b32.xlu2 %v1580_v40, %s2759_s15  ;;  %v1549_v41 = vpop.f32.mrf.mxu0  ;;  %s3353_s15 = sld [smem:[#allocation56_spill]] }
 0x3e1   : > { %v1578_v42 = vpop.f32.mrf.mxu2 }
 0x3e3   : > { %v1305_v44 = vpop.permute.xlu2 %1304 }
 0x3e4   : > { %1308 = vst.msk [vmem:[#allocation9] sm:$0xf] %vm1307_vm9, %v1305_v44  ;;  %1553 = vrot.lane.b32.xlu2 %v1551_v43, %s2760_s20 }
 0x436   : > { %v1583_v51 = vpop.permute.xlu2 %1582 }
 0x438   : > { %v1415_v54 = vpop.permute.xlu0 %1414 }
 0x43e   : > { %v1444_v52 = vpop.permute.xlu1 %1443  ;;  %v1554_v56 = vpop.permute.xlu2 %1553 }
 0x43f   : > { %1447 = vst.msk [vmem:[#allocation9] sm:$0xf] %vm1446_vm10, %v1444_v52  ;;  %v2313_v52 = vld [vmem:[%s3354_s30] ss:$0 sm:$0xff] }
 0x440   : > { %1586 = vst.msk [vmem:[#allocation9] sm:$0xf] %vm1585_vm11, %v1583_v51  ;;  %v2315_v51 = vld [vmem:[%s3353_s15] ss:$0 sm:$0xff] }
 0x446   : > { %v1276_v53 = vpop.permute.xlu1 %1275 }
 0x447   : > { %1279 = vst.msk [vmem:[#allocation8] sm:$0xf] %vm1278_vm12, %v1276_v53  ;;  %v1681_v55 = vld [vmem:[#allocation9] sm:$0xf] }
 0x448   : > { %1418 = vst.msk [vmem:[#allocation8] sm:$0xf] %vm1417_vm13, %v1415_v54  ;;  %2127 = vmatmul.msk.bf16.vlgmr.msrb.gmra.mxu3 %vm934_vm0, %v1681_v55 }
 0x449   : > { %1557 = vst.msk [vmem:[#allocation8] sm:$0xf] %vm1556_vm14, %v1554_v56  ;;  %v2314_v56 = vld [vmem:[%s3355_s19] ss:$0 sm:$0xff] }
 0x450   : > { %v1587_v57 = vld [vmem:[#allocation8] sm:$0xf] }
 0x451   : > { %2118 = vmatmul.msk.bf16.vlgmr.msrb.gmra.mxu1 %vm887_vm1, %v1587_v57 }
 0x4cb   : > { %v1714_v59 = vpop.f32.mrf.mxu3 }
 0x4cc   : > { %v1715_v61 = vadd.f32 %v2310_v58, %v1714_v59 }
 0x4ce   : > { %v1636_v62 = vpop.f32.mrf.mxu1  ;;  %v1718_v63 = vadd.f32 %v1715_v61, %v3071_v6  ;;  %v1724_v6 = vsub.f32 1.0, %v1723_v10 }
 0x4cf   : > { %v1637_v0 = vadd.f32 %v2311_v60, %v1636_v62 }
 0x4d0   : > { %v1719_v1 = vsel %vm934_vm0, %v1718_v63, 0.0  ;;  %v1725_v14 = vmul.f32 %v2333_v8, %v1724_v6 }
 0x4d1   : > { %1720 = vadd.xlane.f32.xlu2 %v1719_v1  ;;  %v1640_v2 = vadd.f32 %v1637_v0, %v3079_v13  ;;  %v1648_v13 = vadd.f32 %v2335_v9, %v1647_v15 }
 0x4d2   : > { %v1726_v16 = vadd.f32 %v2333_v8, %v1725_v14 }
 0x4d3   : > { %v1716_v3 = vpop.f32.mrf.mxu3  ;;  %v1641_v28 = vsel %vm887_vm1, %v1640_v2, 0.0  ;;  %v1650_v21 = vsel %vm1649_vm2, %v2335_v9, %v1648_v13 }
 0x4d4   : > { %1642 = vadd.xlane.f32.xlu1 %v1641_v28  ;;  %v1728_v17 = vsel %vm1727_vm15, %v2333_v8, %v1726_v16 }
 0x4d6   : > { %v1638_v4 = vpop.f32.mrf.mxu1 }
 0x544   : > { %v1721_v18 = vpop.xlane.xlu2 %1720 }
 0x545   : > { %v1729_v20 = vmul.f32 %v1728_v17, %v1721_v18 }
 0x547   : > { %v1730_v22 = vsub.f32 %v1718_v63, %v1729_v20  ;;  %v1643_v23 = vpop.xlane.xlu1 %1642 }
 0x548   : > { %v1651_v24 = vmul.f32 %v1650_v21, %v1643_v23 }
 0x549   : > { %v1731_v25 = vmul.f32 %v1730_v22, %v1730_v22 }
 0x54a   : > { %v1652_v26 = vsub.f32 %v1640_v2, %v1651_v24 }
 0x54b   : > { %v1732_v27 = vsel %vm934_vm0, %v1731_v25, 0.0 }
 0x54c   : > { %1733 = vadd.xlane.f32.xlu1 %v1732_v27  ;;  %v1653_v19 = vmul.f32 %v1652_v26, %v1652_v26 }
 0x54e   : > { %v1654_v29 = vsel %vm887_vm1, %v1653_v19, 0.0 }
 0x54f   : > { %1655 = vadd.xlane.f32.xlu0 %v1654_v29 }
 0x5bf   : > { %v1734_v30 = vpop.xlane.xlu1 %1733 }
 0x5c0   : > { %v1735_v31 = vmul.f32 %v1734_v30, %v1728_v17 }
 0x5c2   : > { %v1736_v32 = vadd.f32 1e-12, %v1735_v31  ;;  %v1656_v33 = vpop.xlane.xlu0 %1655 }
 0x5c3   : > { %v1657_v34 = vmul.f32 %v1656_v33, %v1650_v21 }
 0x5c4   : > { %2336 = vrsqrt.f32 %v1736_v32  ;;  %vm1743_vm4 = vweird.f32 %v1736_v32 }
 0x5c5   : > { %v1658_v35 = vadd.f32 1e-12, %v1657_v34 }
 0x5c7   : > { %2338 = vrsqrt.f32 %v1658_v35  ;;  %vm1665_vm7 = vweird.f32 %v1658_v35 }
 0x5ca   : > { %v2337_v36 = vpop.eup %2336 }
 0x5cb   : > { %v1738_v37 = vmul.f32 %v2337_v36, %v1736_v32  ;;  %vm1744_vm3 = vweird.f32 %v2337_v36 }
 0x5cc   : > { %vm1745_vm5 = vmor %vm1743_vm4, %vm1744_vm3 }
 0x5cd   : > { %v2339_v38 = vpop.eup %2338  ;;  %v1739_v39 = vmul.f32 %v2337_v36, %v1738_v37 }
 0x5ce   : > { %v1660_v40 = vmul.f32 %v2339_v38, %v1658_v35  ;;  %vm1666_vm6 = vweird.f32 %v2339_v38 }
 0x5cf   : > { %v1740_v41 = vmul.f32 0.5, %v1739_v39  ;;  %vm1667_vm8 = vmor %vm1665_vm7, %vm1666_vm6 }
 0x5d0   : > { %v1661_v42 = vmul.f32 %v2339_v38, %v1660_v40 }
 0x5d1   : > { %v1741_v43 = vsub.f32 1.5, %v1740_v41 }
 0x5d2   : > { %v1662_v44 = vmul.f32 0.5, %v1661_v42 }
 0x5d3   : > { %v1742_v45 = vmul.f32 %v2337_v36, %v1741_v43 }
 0x5d4   : > { %v1663_v47 = vsub.f32 1.5, %v1662_v44 }
 0x5d5   : > { %v1746_v48 = vsel %vm1745_vm5, %v2337_v36, %v1742_v45 }
 0x5d6   : > { %v1747_v49 = vmul.f32 %v1746_v48, %v1730_v22  ;;  %v1664_v50 = vmul.f32 %v2339_v38, %v1663_v47 }
 0x5d8   : > { %v1752_v53 = vmul.f32 %v2312_v46, %v1747_v49  ;;  %v1668_v54 = vsel %vm1667_vm8, %v2339_v38, %v1664_v50 }
 0x5d9   : > { %v1669_v55 = vmul.f32 %v1668_v54, %v1652_v26 }
 0x5da   : > { %v1757_v57 = vadd.f32 %v2315_v51, %v1752_v53 }
 0x5db   : > { %v1674_v58 = vmul.f32 %v2313_v52, %v1669_v55 }
 0x5dc   : > { %1758 = vst.msk [vmem:[%s843_s3] sm:$0xff] %vm934_vm0, %v1757_v57 }
 0x5dd   : > { %v1679_v59 = vadd.f32 %v2314_v56, %v1674_v58 }
 0x5de   : > { %2637 = shalt.err (!%p2634_p11)
}
 0x5df   : > { %2183 = dma.vmem_to_hbm [thread:$0]  (%p2964_p4), %s1794_s7, 128, %s1796_s13, %s1765_s9   ;;  %1680 = vst.msk [vmem:[%s836_s24] sm:$0xff] %vm887_vm1, %v1679_v59 }
 0x5e0   : > { %s1760_s20 = scalar_lea.sflag [#allocation12], %s3041_s5  ;;  %s2652_s29 = sshra.s32 %s3217_s23, 4  ;;  %s2653_s29 = int_to_ptr.hbm [resolvable:$true] %s2652_s29 }
 0x5e1   : > { %s2654_s30 = scalar_lea.hbm %s2653_s29, 8  ;;  %s2658_s14 = scalar_lea.hbm %s3352_s26, 16 }
 0x5e2   : > { %p2655_p12 = scmp.ne.s32.totalorder %s2653_s29, %s2654_s30  ;;  %p2659_p2 = scmp.lt.s32.totalorder %s2653_s29, %s3352_s26 }
 0x5e3   : > { %p2660_p7 = scmp.lt.s32.totalorder %s2658_s14, %s2654_s30 }
 0x5e4   : > { %p2656_p13 = pnand %p2655_p12, %p2964_p4 }
 0x5e5   : > { %p2661_p1 = por %p2660_p7, %p2659_p2 }
 0x5e6   : > { %p2657_p0 = pneg %p2656_p13 }
 0x5e8   : > { %p2662_p3 = pnand %p2661_p1, %p2657_p0 }
 0x5ea   : > { %2665 = shalt.err (!%p2662_p3)
}
 0x5eb   : > { %2182 = dma.vmem_to_hbm [thread:$0]  (%p2964_p4), %s1779_s25, 128, %s3217_s23, %s1760_s20  }
 0x5ec PF: > { %s3357_s5 = sld [smem:[#allocation35_spill]] }
 0x5ed   : > { %s3359_s13 = sld [smem:[#allocation38_spill]] }
 0x5f2   : > { %s1807_s24 = sand.u32 1, %s3357_s5  }
 0x5f3   : > { %p3360_p5 = scmp.ge.s32.totalorder %s3359_s13, 2  ;;  %s1808_s9 = scalar_lea.sflag [#allocation12], %s1807_s24 }
 0x5f5   : > { %p2216_p6 = pnand %p3360_p5, %p2972_p9 }
 0x5f7   : > { %p2217_p8 = pneg %p2216_p6 }
 0x5f9   : > { %2711 = dma.done.wait (%p2217_p8), %s1808_s9, 128  }
 0x5fa   : > { %2713 = vsyncadd (%p2217_p8), %s1808_s9, 4294967168  ;;  %s1818_s1 = scalar_lea.sflag [#allocation27], %s1807_s24 }
 0x5fb   : > { %2715 = dma.done.wait (%p2217_p8), %s1818_s1, 128  }
 0x5fc   : > { %2717 = vsyncadd (%p2217_p8), %s1818_s1, 4294967168  ;;  %s46_s25 = sadd.s32 1, %s3359_s13   ;;  %s3361_s18 = sld [smem:[#allocation36_spill]] }
 0x5fd   : > { %p43_p10 = scmp.ge.s32.totalorder %s46_s25, 4   ;;  %s3362_s23 = sld [smem:[#allocation41_spill]] }
 0x5fe   : > { %s3363_s0 = sld [smem:[#allocation39_spill]]  ;;  %s3364_s1 = smov %s2724_s22 }
 0x5ff   : > { %s3366_s24 = smov %s2736_s2 }
 0x600   :  { %45 = sbr.rel (!%p43_p10) target bundleno = 30 (0x1e), region = 212 }
 0x602   : > { %s3365_s22 = smov %s3361_s18 }
 0x604   : > { %s3367_s2 = smov %s3363_s0 }
 0x605   :  { %1824 = vsyncpa [#allocation11], 1 }
 0x606   :  { %1826 = vsyncpa [#allocation11 + $0x1], 1 }
 0x607   :  { %1827 = vsyncpa [#allocation14], 1 }
 0x608   :  { %1829 = vsyncpa [#allocation14 + $0x1], 1 }
 0x609   :  { %1830 = vsyncpa [#allocation17], 1 }
 0x60a   :  { %1831 = vsyncpa [#allocation20], 1 }
 0x60b   :  { %1832 = vsyncpa [#allocation23], 1 }
 0x60c   :  { %1833 = vsyncpa [#allocation12], 1 }
 0x60d   :  { %1835 = vsyncpa [#allocation12 + $0x1], 1 }
 0x60e   :  { %1836 = vsyncpa [#allocation27], 1 }
 0x60f   :  { %1838 = vsyncpa [#allocation27 + $0x1], 1 }

</bundles_post_ra>
